<compile_context>
chip_gen: v5e
topology: v5e:2x2
jax: 0.10.0
libtpu: 0.0.40
codegen_flags: <defaults>
</compile_context>

<pallas_src>
import functools

import numpy as np
import jax
import jax.numpy as jnp
from jax import lax
from jax.experimental import pallas as pl
from jax.experimental.pallas import tpu as pltpu

_HALF_LOG_2PI = 0.9189385332046727  # 0.5 * log(2*pi)
_LANES = 128


def _lgamma_digamma(x, shifts=8):
    """Fused ln Gamma(x) and psi(x) for x > ~0.05 sharing one `shifts`-step shift.

    Digamma shift reciprocals are pairwise-combined so only shifts/2 EUP divides are
    issued (plus 1 recip + 2 logs for the tail).  `shifts` must be even.
    """
    assert shifts % 2 == 0
    prod = None
    racc = None
    for i in range(0, shifts, 2):
        lo = x + float(i)
        pair = lo * (lo + 1.0)
        r = (2.0 * x + float(2 * i + 1)) / pair
        prod = pair if prod is None else prod * pair
        racc = r if racc is None else racc + r
    z = x + float(shifts)
    log_z = jnp.log(z)
    zi = 1.0 / z
    zi2 = zi * zi
    lg_series = zi * (1.0 / 12.0
                      + zi2 * (-1.0 / 360.0
                               + zi2 * (1.0 / 1260.0 + zi2 * (-1.0 / 1680.0))))
    lgam = (z - 0.5) * log_z - z + _HALF_LOG_2PI + lg_series - jnp.log(prod)
    dg_tail = zi2 * (1.0 / 12.0 + zi2 * (-1.0 / 120.0 + zi2 * (1.0 / 252.0)))
    digam = log_z - 0.5 * zi - dg_tail - racc
    return lgam, digam


def _lgamma(x, shifts=8):
    """ln Gamma(x) only (single log of the running shift product)."""
    prod = None
    for i in range(shifts):
        term = x + float(i)
        prod = term if prod is None else prod * term
    z = x + float(shifts)
    log_z = jnp.log(z)
    zi = 1.0 / z
    zi2 = zi * zi
    series = zi * (1.0 / 12.0
                   + zi2 * (-1.0 / 360.0
                            + zi2 * (1.0 / 1260.0 + zi2 * (-1.0 / 1680.0))))
    return (z - 0.5) * log_z - z + _HALF_LOG_2PI + series - jnp.log(prod)


def _loss_kernel(ori1_ref, s1rec_ref, sp1rec_ref,
                 ori2_ref, s2rec_ref, sp2rec_ref,
                 s1mlp_ref, s2mlp_ref,
                 a1_ref, a2_ref, p1_ref, p2_ref, prior_row_ref,
                 out_ref, *,
                 inv_temp, batch, n_valid1, n_valid2, mask1, mask2, prior_reps):
    f32 = jnp.float32
    inv_t = f32(inv_temp)
    eps2 = f32(1e-24)          # (1e-12)^2 -> matches F.normalize's eps after rsqrt

    def center_rownorm(x):
        x = x - jnp.mean(x)                            # global-mean center
        ssq = jnp.sum(x * x, axis=1, keepdims=True)
        return x * lax.rsqrt(jnp.maximum(ssq, eps2))   # rsqrt*mul instead of sqrt+div

    def frob(d):
        # TODO(synk): no eps under the sqrt; fine forward-only.
        return jnp.sqrt(jnp.sum(d * d))

    # ---- reconstruction losses (ori normalizations computed once, reused) ----
    n_ori1 = center_rownorm(ori1_ref[...])
    n_ori2 = center_rownorm(ori2_ref[...])
    rec_loss = (frob(center_rownorm(s1rec_ref[...]) - n_ori1)
                + frob(center_rownorm(sp1rec_ref[...]) - n_ori1)
                + frob(center_rownorm(s2rec_ref[...]) - n_ori2)
                + frob(center_rownorm(sp2rec_ref[...]) - n_ori2))

    # ---- contrastive (NT-Xent instance) loss, block-wise sim ----
    # Rows are L2-normalized, so the diagonal of sim is inv_t * ||z_i||^2; it is
    # removed analytically (no (2B,2B) concat, no iota / -1e30 masking, no scratch).
    z1 = center_rownorm(s1mlp_ref[...])
    z2 = center_rownorm(s2mlp_ref[...])
    dims = (((1,), (1,)), ((), ()))      # contract feature dims -> z @ z.T on the MXU
    s11 = lax.dot_general(z1, z1, dims, preferred_element_type=jnp.float32) * inv_t
    s12 = lax.dot_general(z1, z2, dims, preferred_element_type=jnp.float32) * inv_t
    s21 = lax.dot_general(z2, z1, dims, preferred_element_type=jnp.float32) * inv_t
    s22 = lax.dot_general(z2, z2, dims, preferred_element_type=jnp.float32) * inv_t
    d1 = inv_t * jnp.sum(z1 * z1, axis=1, keepdims=True)   # diag(s11)
    d2 = inv_t * jnp.sum(z2 * z2, axis=1, keepdims=True)   # diag(s22)

    def lse_rows(sa, sb, diag):
        m = jnp.maximum(jnp.max(sa, axis=1, keepdims=True),
                        jnp.max(sb, axis=1, keepdims=True))
        s = (jnp.sum(jnp.exp(sa - m), axis=1, keepdims=True)
             + jnp.sum(jnp.exp(sb - m), axis=1, keepdims=True)
             - jnp.exp(diag - m))        # drop the self-similarity term
        return jnp.log(s) + m

    lse_sum = jnp.sum(lse_rows(s11, s12, d1)) + jnp.sum(lse_rows(s21, s22, d2))
    pos_sum = 2.0 * inv_t * jnp.sum(z1 * z2)   # sum of sim[i, i+-B] over all 2B rows
    contrastive = (lse_sum - pos_sum) / f32(2 * batch)

    # ---- KL of per-cluster Gamma posteriors vs. Dirichlet-like prior ----
    def kl_slab(a_ref, p_ref, n_valid, need_mask):
        a = a_ref[...]
        p = p_ref[...]                   # (1,128) broadcast row, or full layout fallback
        lg_a, dg_a = _lgamma_digamma(a)
        contrib = (a - p) * dg_a - lg_a
        if need_mask:                    # only traced when padding exists with (1,128) prior
            rows, lanes = a.shape
            flat = (lax.broadcasted_iota(jnp.int32, a.shape, 0) * lanes
                    + lax.broadcasted_iota(jnp.int32, a.shape, 1))
            contrib = jnp.where(flat < n_valid, contrib, f32(0.0))
        return jnp.sum(contrib)

    # sum(lgamma(prior)) computed once on one padded lane row (pads = 1.0 -> lgamma 0)
    # and scaled by the 2*K*B replication count of the torch loop.
    kl = (kl_slab(a1_ref, p1_ref, n_valid1, mask1)
          + kl_slab(a2_ref, p2_ref, n_valid2, mask2)
          + f32(prior_reps) * jnp.sum(_lgamma(prior_row_ref[...], shifts=10)))

    out_ref[0] = contrastive + f32(0.7) * rec_loss + kl


def shared_and_specific_loss(params, K):
    (prior_alpha, ori1, ori2, shared1_output, shared2_output,
     specific1_output, specific2_output, shared1_rec, shared2_rec,
     specific1_rec, specific2_rec, shared1_mlp, shared2_mlp,
     specific1_alpha, specific2_alpha, temperature, batch_size) = params
    # shared*/specific*_output are unused by the torch forward as well.
    del shared1_output, shared2_output, specific1_output, specific2_output

    f32 = lambda x: jnp.asarray(x, jnp.float32)
    B = int(batch_size)
    H = int(shared1_mlp.shape[1])
    D1 = int(ori1.shape[1])
    D2 = int(ori2.shape[1])
    Dz = int(prior_alpha.shape[-1])
    assert Dz <= _LANES, "prior dim > 128 lanes not handled"  # TODO(synk): multi-row prior
    inv_temp = 1.0 / float(temperature)   # host scalar folded at trace time

    prior = f32(prior_alpha).reshape(-1)

    # Lane-dense (rows, 128) view of each alpha tensor.  A reshape of a contiguous
    # array is a bitcast in XLA (no extra HBM pass), unlike the old concat/tile slabs.
    def pack_alpha(a):
        a = f32(a)
        if a.shape[0] != K:              # torch loop only consumes the first K clusters
            a = a[:K]
        n = int(np.prod(a.shape))
        rows = -(-n // _LANES)
        pad = rows * _LANES - n
        if pad == 0:
            return a.reshape(rows, _LANES), n, 0
        flat = jnp.concatenate([a.reshape(-1), jnp.ones((pad,), jnp.float32)])
        return flat.reshape(rows, _LANES), n, pad

    a1_slab, n1, pad1 = pack_alpha(specific1_alpha)
    a2_slab, n2, pad2 = pack_alpha(specific2_alpha)

    if _LANES % Dz == 0:
        # One 128-lane row of prior repetitions broadcasts (sublane) over every slab row.
        p_row = jnp.tile(prior, _LANES // Dz).reshape(1, _LANES)
        p1, p2 = p_row, p_row
        mask1, mask2 = pad1 > 0, pad2 > 0
    else:
        # TODO(synk): fallback materializes the tiled prior (still no lgamma chain on it).
        def tile_prior(n, rows):
            reps = -(-(rows * _LANES) // Dz)
            p = jnp.tile(prior, reps)[:rows * _LANES]
            p = jnp.where(jnp.arange(rows * _LANES) < n, p, 1.0)  # pads contribute zero
            return p.reshape(rows, _LANES)
        p1 = tile_prior(n1, int(a1_slab.shape[0]))
        p2 = tile_prior(n2, int(a2_slab.shape[0]))
        mask1 = mask2 = False

    if Dz == _LANES:
        prior_row = prior.reshape(1, _LANES)
    else:
        prior_row = jnp.concatenate(
            [prior, jnp.ones((_LANES - Dz,), jnp.float32)]).reshape(1, _LANES)

    kernel = functools.partial(
        _loss_kernel, inv_temp=inv_temp, batch=B,
        n_valid1=n1, n_valid2=n2, mask1=mask1, mask2=mask2,
        prior_reps=float(2 * K * B))

    n_alpha = n1 + n2
    rec_elems = 3 * B * D1 + 3 * B * D2
    in_bytes = 4 * (rec_elems + 2 * B * H + int(a1_slab.size) + int(a2_slab.size)
                    + int(p1.size) + int(p2.size) + _LANES)
    cost = pl.CostEstimate(
        flops=int(4 * 2 * B * B * H + 20 * n_alpha + 10 * (rec_elems + 2 * B * H)),
        transcendentals=int(7 * n_alpha + 4 * 4 * B * B + 12 * _LANES),
        bytes_accessed=int(in_bytes + 4))

    vmem = pl.BlockSpec(memory_space=pltpu.MemorySpace.VMEM)
    out = pl.pallas_call(
        kernel,
        out_shape=jax.ShapeDtypeStruct((1,), jnp.float32),
        in_specs=[vmem] * 13,
        out_specs=pl.BlockSpec(memory_space=pltpu.MemorySpace.SMEM),
        compiler_params=pltpu.CompilerParams(vmem_limit_bytes=32 * 1024 * 1024),
        cost_estimate=cost,
    )(f32(ori1), f32(shared1_rec), f32(specific1_rec),
      f32(ori2), f32(shared2_rec), f32(specific2_rec),
      f32(shared1_mlp), f32(shared2_mlp),
      a1_slab, a2_slab, p1, p2, prior_row)
    return out[0]


def _reference_loss(params, K):
    """Pure-JAX reference (lax.lgamma / lax.digamma) mirroring torch semantics."""
    (prior_alpha, ori1, ori2, _s1o, _s2o, _sp1o, _sp2o,
     s1rec, s2rec, sp1rec, sp2rec, s1mlp, s2mlp,
     a1, a2, temperature, batch_size) = params

    def center_rownorm(x):
        x = x - jnp.mean(x)
        nrm = jnp.linalg.norm(x, axis=1, keepdims=True)
        return x / jnp.maximum(nrm, 1e-12)

    def rec_loss(rec, ori):
        return jnp.linalg.norm(center_rownorm(rec) - center_rownorm(ori))

    rl = (rec_loss(s1rec, ori1) + rec_loss(sp1rec, ori1)
          + rec_loss(s2rec, ori2) + rec_loss(sp2rec, ori2))

    z1, z2 = center_rownorm(s1mlp), center_rownorm(s2mlp)
    B = batch_size
    N = 2 * B
    z = jnp.concatenate([z1, z2], axis=0)
    sim = (z @ z.T) / temperature
    sim_nd = jnp.where(jnp.eye(N, dtype=bool), -1e30, sim)
    lse = jax.nn.logsumexp(sim_nd, axis=1)
    pos = jnp.concatenate([jnp.diagonal(sim, B), jnp.diagonal(sim, -B)])
    contrastive = jnp.sum(lse - pos) / N

    def kl_term(aq):  # aq: (K, B, Dz)
        first = jnp.sum(lax.lgamma(prior_alpha))
        second = jnp.sum(lax.lgamma(aq), axis=-1)
        third = jnp.sum((aq - prior_alpha) * lax.digamma(aq), axis=-1)
        return jnp.sum(first - second + third)

    kl = kl_term(a1) + kl_term(a2)
    return contrastive + 0.7 * rl + kl


if __name__ == "__main__":
    B, D1, D2, H, Dz, K = 8, 32, 48, 32, 16, 3
    temperature = 0.5

    key = jax.random.PRNGKey(0)
    ks = jax.random.split(key, 14)
    ori1 = jax.random.normal(ks[0], (B, D1), jnp.float32)
    ori2 = jax.random.normal(ks[1], (B, D2), jnp.float32)
    shared1_output = jax.random.normal(ks[2], (B, H), jnp.float32)    # unused by forward
    shared2_output = jax.random.normal(ks[3], (B, H), jnp.float32)    # unused by forward
    specific1_output = jax.random.normal(ks[4], (B, H), jnp.float32)  # unused by forward
    specific2_output = jax.random.normal(ks[5], (B, H), jnp.float32)  # unused by forward
    shared1_rec = jax.random.normal(ks[6], (B, D1), jnp.float32)
    shared2_rec = jax.random.normal(ks[7], (B, D2), jnp.float32)
    specific1_rec = jax.random.normal(ks[8], (B, D1), jnp.float32)
    specific2_rec = jax.random.normal(ks[9], (B, D2), jnp.float32)
    shared1_mlp = jax.random.normal(ks[10], (B, H), jnp.float32)
    shared2_mlp = jax.random.normal(ks[11], (B, H), jnp.float32)
    specific1_alpha = jax.nn.softplus(jax.random.normal(ks[12], (K, B, Dz))) + 0.1
    specific2_alpha = jax.nn.softplus(jax.random.normal(ks[13], (K, B, Dz))) + 0.1
    prior_alpha = jnp.full((Dz,), 1.0 / Dz, jnp.float32)  # Dirichlet-style prior concentration

    params = (prior_alpha, ori1, ori2, shared1_output, shared2_output,
              specific1_output, specific2_output, shared1_rec, shared2_rec,
              specific1_rec, specific2_rec, shared1_mlp, shared2_mlp,
              specific1_alpha, specific2_alpha, temperature, B)

    loss_kernel = shared_and_specific_loss(params, K)
    jax.block_until_ready(loss_kernel)

    loss_ref = _reference_loss(params, K)
    np.testing.assert_allclose(np.asarray(loss_kernel), np.asarray(loss_ref),
                               rtol=1e-3, atol=1e-2)
    print("KERNEL_OK")
</pallas_src>

<mosaic_0001>
module attributes {stable_mosaic.version = 11 : i64} {
  func.func @_loss_kernel(%arg0: memref<8x32xf32, #tpu.memory_space<vmem>>, %arg1: memref<8x32xf32, #tpu.memory_space<vmem>>, %arg2: memref<8x32xf32, #tpu.memory_space<vmem>>, %arg3: memref<8x48xf32, #tpu.memory_space<vmem>>, %arg4: memref<8x48xf32, #tpu.memory_space<vmem>>, %arg5: memref<8x48xf32, #tpu.memory_space<vmem>>, %arg6: memref<8x32xf32, #tpu.memory_space<vmem>>, %arg7: memref<8x32xf32, #tpu.memory_space<vmem>>, %arg8: memref<3x128xf32, #tpu.memory_space<vmem>>, %arg9: memref<3x128xf32, #tpu.memory_space<vmem>>, %arg10: memref<1x128xf32, #tpu.memory_space<vmem>>, %arg11: memref<1x128xf32, #tpu.memory_space<vmem>>, %arg12: memref<1x128xf32, #tpu.memory_space<vmem>>, %arg13: memref<1xf32, #tpu.memory_space<smem>>) attributes {dimension_semantics = [], scalar_prefetch = 0 : i64, scratch_operands = 0 : i64, tpu.core_type = #tpu.core_type<tc>} {
    %c0 = arith.constant 0 : index
    %c0_0 = arith.constant 0 : index
    %0 = vector.load %arg0[%c0, %c0_0] : memref<8x32xf32, #tpu.memory_space<vmem>>, vector<8x32xf32>
    %1 = vector.shape_cast %0 : vector<8x32xf32> to vector<1x8x32xf32>
    %cst = arith.constant dense<0.000000e+00> : vector<1xf32>
    %2 = vector.multi_reduction <add>, %1, %cst [1, 2] : vector<1x8x32xf32> to vector<1xf32>
    %3 = vector.shape_cast %2 : vector<1xf32> to vector<1x1x1xf32>
    %4 = vector.extract %3[0, 0, 0] : f32 from vector<1x1x1xf32>
    %cst_1 = arith.constant 2.560000e+02 : f32
    %5 = arith.divf %4, %cst_1 : f32
    %6 = vector.broadcast %5 : f32 to vector<8x32xf32>
    %7 = arith.subf %0, %6 : vector<8x32xf32>
    %8 = arith.mulf %7, %7 : vector<8x32xf32>
    %cst_2 = arith.constant dense<0.000000e+00> : vector<8xf32>
    %9 = vector.multi_reduction <add>, %8, %cst_2 [1] : vector<8x32xf32> to vector<8xf32>
    %10 = vector.shape_cast %9 : vector<8xf32> to vector<8x1xf32>
    %cst_3 = arith.constant 1.000000e-24 : f32
    %11 = vector.broadcast %cst_3 : f32 to vector<8x1xf32>
    %12 = arith.maximumf %10, %11 : vector<8x1xf32>
    %13 = math.rsqrt %12 : vector<8x1xf32>
    %14 = vector.broadcast %13 : vector<8x1xf32> to vector<8x32xf32>
    %15 = arith.mulf %7, %14 : vector<8x32xf32>
    %c0_4 = arith.constant 0 : index
    %c0_5 = arith.constant 0 : index
    %16 = vector.load %arg3[%c0_4, %c0_5] : memref<8x48xf32, #tpu.memory_space<vmem>>, vector<8x48xf32>
    %17 = vector.shape_cast %16 : vector<8x48xf32> to vector<1x8x48xf32>
    %cst_6 = arith.constant dense<0.000000e+00> : vector<1xf32>
    %18 = vector.multi_reduction <add>, %17, %cst_6 [1, 2] : vector<1x8x48xf32> to vector<1xf32>
    %19 = vector.shape_cast %18 : vector<1xf32> to vector<1x1x1xf32>
    %20 = vector.extract %19[0, 0, 0] : f32 from vector<1x1x1xf32>
    %cst_7 = arith.constant 3.840000e+02 : f32
    %21 = arith.divf %20, %cst_7 : f32
    %22 = vector.broadcast %21 : f32 to vector<8x48xf32>
    %23 = arith.subf %16, %22 : vector<8x48xf32>
    %24 = arith.mulf %23, %23 : vector<8x48xf32>
    %cst_8 = arith.constant dense<0.000000e+00> : vector<8xf32>
    %25 = vector.multi_reduction <add>, %24, %cst_8 [1] : vector<8x48xf32> to vector<8xf32>
    %26 = vector.shape_cast %25 : vector<8xf32> to vector<8x1xf32>
    %cst_9 = arith.constant 1.000000e-24 : f32
    %27 = vector.broadcast %cst_9 : f32 to vector<8x1xf32>
    %28 = arith.maximumf %26, %27 : vector<8x1xf32>
    %29 = math.rsqrt %28 : vector<8x1xf32>
    %30 = vector.broadcast %29 : vector<8x1xf32> to vector<8x48xf32>
    %31 = arith.mulf %23, %30 : vector<8x48xf32>
    %c0_10 = arith.constant 0 : index
    %c0_11 = arith.constant 0 : index
    %32 = vector.load %arg1[%c0_10, %c0_11] : memref<8x32xf32, #tpu.memory_space<vmem>>, vector<8x32xf32>
    %33 = vector.shape_cast %32 : vector<8x32xf32> to vector<1x8x32xf32>
    %cst_12 = arith.constant dense<0.000000e+00> : vector<1xf32>
    %34 = vector.multi_reduction <add>, %33, %cst_12 [1, 2] : vector<1x8x32xf32> to vector<1xf32>
    %35 = vector.shape_cast %34 : vector<1xf32> to vector<1x1x1xf32>
    %36 = vector.extract %35[0, 0, 0] : f32 from vector<1x1x1xf32>
    %cst_13 = arith.constant 2.560000e+02 : f32
    %37 = arith.divf %36, %cst_13 : f32
    %38 = vector.broadcast %37 : f32 to vector<8x32xf32>
    %39 = arith.subf %32, %38 : vector<8x32xf32>
    %40 = arith.mulf %39, %39 : vector<8x32xf32>
    %cst_14 = arith.constant dense<0.000000e+00> : vector<8xf32>
    %41 = vector.multi_reduction <add>, %40, %cst_14 [1] : vector<8x32xf32> to vector<8xf32>
    %42 = vector.shape_cast %41 : vector<8xf32> to vector<8x1xf32>
    %cst_15 = arith.constant 1.000000e-24 : f32
    %43 = vector.broadcast %cst_15 : f32 to vector<8x1xf32>
    %44 = arith.maximumf %42, %43 : vector<8x1xf32>
    %45 = math.rsqrt %44 : vector<8x1xf32>
    %46 = vector.broadcast %45 : vector<8x1xf32> to vector<8x32xf32>
    %47 = arith.mulf %39, %46 : vector<8x32xf32>
    %48 = arith.subf %47, %15 : vector<8x32xf32>
    %49 = arith.mulf %48, %48 : vector<8x32xf32>
    %50 = vector.shape_cast %49 : vector<8x32xf32> to vector<1x8x32xf32>
    %cst_16 = arith.constant dense<0.000000e+00> : vector<1xf32>
    %51 = vector.multi_reduction <add>, %50, %cst_16 [1, 2] : vector<1x8x32xf32> to vector<1xf32>
    %52 = vector.shape_cast %51 : vector<1xf32> to vector<1x1x1xf32>
    %53 = vector.extract %52[0, 0, 0] : f32 from vector<1x1x1xf32>
    %54 = math.sqrt %53 : f32
    %c0_17 = arith.constant 0 : index
    %c0_18 = arith.constant 0 : index
    %55 = vector.load %arg2[%c0_17, %c0_18] : memref<8x32xf32, #tpu.memory_space<vmem>>, vector<8x32xf32>
    %56 = vector.shape_cast %55 : vector<8x32xf32> to vector<1x8x32xf32>
    %cst_19 = arith.constant dense<0.000000e+00> : vector<1xf32>
    %57 = vector.multi_reduction <add>, %56, %cst_19 [1, 2] : vector<1x8x32xf32> to vector<1xf32>
    %58 = vector.shape_cast %57 : vector<1xf32> to vector<1x1x1xf32>
    %59 = vector.extract %58[0, 0, 0] : f32 from vector<1x1x1xf32>
    %cst_20 = arith.constant 2.560000e+02 : f32
    %60 = arith.divf %59, %cst_20 : f32
    %61 = vector.broadcast %60 : f32 to vector<8x32xf32>
    %62 = arith.subf %55, %61 : vector<8x32xf32>
    %63 = arith.mulf %62, %62 : vector<8x32xf32>
    %cst_21 = arith.constant dense<0.000000e+00> : vector<8xf32>
    %64 = vector.multi_reduction <add>, %63, %cst_21 [1] : vector<8x32xf32> to vector<8xf32>
    %65 = vector.shape_cast %64 : vector<8xf32> to vector<8x1xf32>
    %cst_22 = arith.constant 1.000000e-24 : f32
    %66 = vector.broadcast %cst_22 : f32 to vector<8x1xf32>
    %67 = arith.maximumf %65, %66 : vector<8x1xf32>
    %68 = math.rsqrt %67 : vector<8x1xf32>
    %69 = vector.broadcast %68 : vector<8x1xf32> to vector<8x32xf32>
    %70 = arith.mulf %62, %69 : vector<8x32xf32>
    %71 = arith.subf %70, %15 : vector<8x32xf32>
    %72 = arith.mulf %71, %71 : vector<8x32xf32>
    %73 = vector.shape_cast %72 : vector<8x32xf32> to vector<1x8x32xf32>
    %cst_23 = arith.constant dense<0.000000e+00> : vector<1xf32>
    %74 = vector.multi_reduction <add>, %73, %cst_23 [1, 2] : vector<1x8x32xf32> to vector<1xf32>
    %75 = vector.shape_cast %74 : vector<1xf32> to vector<1x1x1xf32>
    %76 = vector.extract %75[0, 0, 0] : f32 from vector<1x1x1xf32>
    %77 = math.sqrt %76 : f32
    %78 = arith.addf %54, %77 : f32
    %c0_24 = arith.constant 0 : index
    %c0_25 = arith.constant 0 : index
    %79 = vector.load %arg4[%c0_24, %c0_25] : memref<8x48xf32, #tpu.memory_space<vmem>>, vector<8x48xf32>
    %80 = vector.shape_cast %79 : vector<8x48xf32> to vector<1x8x48xf32>
    %cst_26 = arith.constant dense<0.000000e+00> : vector<1xf32>
    %81 = vector.multi_reduction <add>, %80, %cst_26 [1, 2] : vector<1x8x48xf32> to vector<1xf32>
    %82 = vector.shape_cast %81 : vector<1xf32> to vector<1x1x1xf32>
    %83 = vector.extract %82[0, 0, 0] : f32 from vector<1x1x1xf32>
    %cst_27 = arith.constant 3.840000e+02 : f32
    %84 = arith.divf %83, %cst_27 : f32
    %85 = vector.broadcast %84 : f32 to vector<8x48xf32>
    %86 = arith.subf %79, %85 : vector<8x48xf32>
    %87 = arith.mulf %86, %86 : vector<8x48xf32>
    %cst_28 = arith.constant dense<0.000000e+00> : vector<8xf32>
    %88 = vector.multi_reduction <add>, %87, %cst_28 [1] : vector<8x48xf32> to vector<8xf32>
    %89 = vector.shape_cast %88 : vector<8xf32> to vector<8x1xf32>
    %cst_29 = arith.constant 1.000000e-24 : f32
    %90 = vector.broadcast %cst_29 : f32 to vector<8x1xf32>
    %91 = arith.maximumf %89, %90 : vector<8x1xf32>
    %92 = math.rsqrt %91 : vector<8x1xf32>
    %93 = vector.broadcast %92 : vector<8x1xf32> to vector<8x48xf32>
    %94 = arith.mulf %86, %93 : vector<8x48xf32>
    %95 = arith.subf %94, %31 : vector<8x48xf32>
    %96 = arith.mulf %95, %95 : vector<8x48xf32>
    %97 = vector.shape_cast %96 : vector<8x48xf32> to vector<1x8x48xf32>
    %cst_30 = arith.constant dense<0.000000e+00> : vector<1xf32>
    %98 = vector.multi_reduction <add>, %97, %cst_30 [1, 2] : vector<1x8x48xf32> to vector<1xf32>
    %99 = vector.shape_cast %98 : vector<1xf32> to vector<1x1x1xf32>
    %100 = vector.extract %99[0, 0, 0] : f32 from vector<1x1x1xf32>
    %101 = math.sqrt %100 : f32
    %102 = arith.addf %78, %101 : f32
    %c0_31 = arith.constant 0 : index
    %c0_32 = arith.constant 0 : index
    %103 = vector.load %arg5[%c0_31, %c0_32] : memref<8x48xf32, #tpu.memory_space<vmem>>, vector<8x48xf32>
    %104 = vector.shape_cast %103 : vector<8x48xf32> to vector<1x8x48xf32>
    %cst_33 = arith.constant dense<0.000000e+00> : vector<1xf32>
    %105 = vector.multi_reduction <add>, %104, %cst_33 [1, 2] : vector<1x8x48xf32> to vector<1xf32>
    %106 = vector.shape_cast %105 : vector<1xf32> to vector<1x1x1xf32>
    %107 = vector.extract %106[0, 0, 0] : f32 from vector<1x1x1xf32>
    %cst_34 = arith.constant 3.840000e+02 : f32
    %108 = arith.divf %107, %cst_34 : f32
    %109 = vector.broadcast %108 : f32 to vector<8x48xf32>
    %110 = arith.subf %103, %109 : vector<8x48xf32>
    %111 = arith.mulf %110, %110 : vector<8x48xf32>
    %cst_35 = arith.constant dense<0.000000e+00> : vector<8xf32>
    %112 = vector.multi_reduction <add>, %111, %cst_35 [1] : vector<8x48xf32> to vector<8xf32>
    %113 = vector.shape_cast %112 : vector<8xf32> to vector<8x1xf32>
    %cst_36 = arith.constant 1.000000e-24 : f32
    %114 = vector.broadcast %cst_36 : f32 to vector<8x1xf32>
    %115 = arith.maximumf %113, %114 : vector<8x1xf32>
    %116 = math.rsqrt %115 : vector<8x1xf32>
    %117 = vector.broadcast %116 : vector<8x1xf32> to vector<8x48xf32>
    %118 = arith.mulf %110, %117 : vector<8x48xf32>
    %119 = arith.subf %118, %31 : vector<8x48xf32>
    %120 = arith.mulf %119, %119 : vector<8x48xf32>
    %121 = vector.shape_cast %120 : vector<8x48xf32> to vector<1x8x48xf32>
    %cst_37 = arith.constant dense<0.000000e+00> : vector<1xf32>
    %122 = vector.multi_reduction <add>, %121, %cst_37 [1, 2] : vector<1x8x48xf32> to vector<1xf32>
    %123 = vector.shape_cast %122 : vector<1xf32> to vector<1x1x1xf32>
    %124 = vector.extract %123[0, 0, 0] : f32 from vector<1x1x1xf32>
    %125 = math.sqrt %124 : f32
    %126 = arith.addf %102, %125 : f32
    %c0_38 = arith.constant 0 : index
    %c0_39 = arith.constant 0 : index
    %127 = vector.load %arg6[%c0_38, %c0_39] : memref<8x32xf32, #tpu.memory_space<vmem>>, vector<8x32xf32>
    %128 = vector.shape_cast %127 : vector<8x32xf32> to vector<1x8x32xf32>
    %cst_40 = arith.constant dense<0.000000e+00> : vector<1xf32>
    %129 = vector.multi_reduction <add>, %128, %cst_40 [1, 2] : vector<1x8x32xf32> to vector<1xf32>
    %130 = vector.shape_cast %129 : vector<1xf32> to vector<1x1x1xf32>
    %131 = vector.extract %130[0, 0, 0] : f32 from vector<1x1x1xf32>
    %cst_41 = arith.constant 2.560000e+02 : f32
    %132 = arith.divf %131, %cst_41 : f32
    %133 = vector.broadcast %132 : f32 to vector<8x32xf32>
    %134 = arith.subf %127, %133 : vector<8x32xf32>
    %135 = arith.mulf %134, %134 : vector<8x32xf32>
    %cst_42 = arith.constant dense<0.000000e+00> : vector<8xf32>
    %136 = vector.multi_reduction <add>, %135, %cst_42 [1] : vector<8x32xf32> to vector<8xf32>
    %137 = vector.shape_cast %136 : vector<8xf32> to vector<8x1xf32>
    %cst_43 = arith.constant 1.000000e-24 : f32
    %138 = vector.broadcast %cst_43 : f32 to vector<8x1xf32>
    %139 = arith.maximumf %137, %138 : vector<8x1xf32>
    %140 = math.rsqrt %139 : vector<8x1xf32>
    %141 = vector.broadcast %140 : vector<8x1xf32> to vector<8x32xf32>
    %142 = arith.mulf %134, %141 : vector<8x32xf32>
    %c0_44 = arith.constant 0 : index
    %c0_45 = arith.constant 0 : index
    %143 = vector.load %arg7[%c0_44, %c0_45] : memref<8x32xf32, #tpu.memory_space<vmem>>, vector<8x32xf32>
    %144 = vector.shape_cast %143 : vector<8x32xf32> to vector<1x8x32xf32>
    %cst_46 = arith.constant dense<0.000000e+00> : vector<1xf32>
    %145 = vector.multi_reduction <add>, %144, %cst_46 [1, 2] : vector<1x8x32xf32> to vector<1xf32>
    %146 = vector.shape_cast %145 : vector<1xf32> to vector<1x1x1xf32>
    %147 = vector.extract %146[0, 0, 0] : f32 from vector<1x1x1xf32>
    %cst_47 = arith.constant 2.560000e+02 : f32
    %148 = arith.divf %147, %cst_47 : f32
    %149 = vector.broadcast %148 : f32 to vector<8x32xf32>
    %150 = arith.subf %143, %149 : vector<8x32xf32>
    %151 = arith.mulf %150, %150 : vector<8x32xf32>
    %cst_48 = arith.constant dense<0.000000e+00> : vector<8xf32>
    %152 = vector.multi_reduction <add>, %151, %cst_48 [1] : vector<8x32xf32> to vector<8xf32>
    %153 = vector.shape_cast %152 : vector<8xf32> to vector<8x1xf32>
    %cst_49 = arith.constant 1.000000e-24 : f32
    %154 = vector.broadcast %cst_49 : f32 to vector<8x1xf32>
    %155 = arith.maximumf %153, %154 : vector<8x1xf32>
    %156 = math.rsqrt %155 : vector<8x1xf32>
    %157 = vector.broadcast %156 : vector<8x1xf32> to vector<8x32xf32>
    %158 = arith.mulf %150, %157 : vector<8x32xf32>
    %cst_50 = arith.constant dense<0.000000e+00> : vector<8x8xf32>
    %159 = tpu.matmul %142, %142, %cst_50 {dimension_numbers = #tpu.dot_dimension_numbers<[1], [1], [0], [0], [0, 0, 1, 0], [], []>} : vector<8x32xf32>, vector<8x32xf32>, vector<8x8xf32> -> vector<8x8xf32>
    %cst_51 = arith.constant 2.000000e+00 : f32
    %160 = vector.broadcast %cst_51 : f32 to vector<8x8xf32>
    %161 = arith.mulf %159, %160 : vector<8x8xf32>
    %cst_52 = arith.constant dense<0.000000e+00> : vector<8x8xf32>
    %162 = tpu.matmul %142, %158, %cst_52 {dimension_numbers = #tpu.dot_dimension_numbers<[1], [1], [0], [0], [0, 0, 1, 0], [], []>} : vector<8x32xf32>, vector<8x32xf32>, vector<8x8xf32> -> vector<8x8xf32>
    %cst_53 = arith.constant 2.000000e+00 : f32
    %163 = vector.broadcast %cst_53 : f32 to vector<8x8xf32>
    %164 = arith.mulf %162, %163 : vector<8x8xf32>
    %cst_54 = arith.constant dense<0.000000e+00> : vector<8x8xf32>
    %165 = tpu.matmul %158, %142, %cst_54 {dimension_numbers = #tpu.dot_dimension_numbers<[1], [1], [0], [0], [0, 0, 1, 0], [], []>} : vector<8x32xf32>, vector<8x32xf32>, vector<8x8xf32> -> vector<8x8xf32>
    %cst_55 = arith.constant 2.000000e+00 : f32
    %166 = vector.broadcast %cst_55 : f32 to vector<8x8xf32>
    %167 = arith.mulf %165, %166 : vector<8x8xf32>
    %cst_56 = arith.constant dense<0.000000e+00> : vector<8x8xf32>
    %168 = tpu.matmul %158, %158, %cst_56 {dimension_numbers = #tpu.dot_dimension_numbers<[1], [1], [0], [0], [0, 0, 1, 0], [], []>} : vector<8x32xf32>, vector<8x32xf32>, vector<8x8xf32> -> vector<8x8xf32>
    %cst_57 = arith.constant 2.000000e+00 : f32
    %169 = vector.broadcast %cst_57 : f32 to vector<8x8xf32>
    %170 = arith.mulf %168, %169 : vector<8x8xf32>
    %171 = arith.mulf %142, %142 : vector<8x32xf32>
    %cst_58 = arith.constant dense<0.000000e+00> : vector<8xf32>
    %172 = vector.multi_reduction <add>, %171, %cst_58 [1] : vector<8x32xf32> to vector<8xf32>
    %173 = vector.shape_cast %172 : vector<8xf32> to vector<8x1xf32>
    %cst_59 = arith.constant 2.000000e+00 : f32
    %174 = vector.broadcast %cst_59 : f32 to vector<8x1xf32>
    %175 = arith.mulf %174, %173 : vector<8x1xf32>
    %176 = arith.mulf %158, %158 : vector<8x32xf32>
    %cst_60 = arith.constant dense<0.000000e+00> : vector<8xf32>
    %177 = vector.multi_reduction <add>, %176, %cst_60 [1] : vector<8x32xf32> to vector<8xf32>
    %178 = vector.shape_cast %177 : vector<8xf32> to vector<8x1xf32>
    %cst_61 = arith.constant 2.000000e+00 : f32
    %179 = vector.broadcast %cst_61 : f32 to vector<8x1xf32>
    %180 = arith.mulf %179, %178 : vector<8x1xf32>
    %cst_62 = arith.constant dense<0xFF800000> : vector<8xf32>
    %181 = vector.multi_reduction <maximumf>, %161, %cst_62 [1] : vector<8x8xf32> to vector<8xf32>
    %182 = vector.shape_cast %181 : vector<8xf32> to vector<8x1xf32>
    %cst_63 = arith.constant dense<0xFF800000> : vector<8xf32>
    %183 = vector.multi_reduction <maximumf>, %164, %cst_63 [1] : vector<8x8xf32> to vector<8xf32>
    %184 = vector.shape_cast %183 : vector<8xf32> to vector<8x1xf32>
    %185 = arith.maximumf %182, %184 : vector<8x1xf32>
    %186 = vector.broadcast %185 : vector<8x1xf32> to vector<8x8xf32>
    %187 = arith.subf %161, %186 : vector<8x8xf32>
    %188 = math.exp %187 : vector<8x8xf32>
    %cst_64 = arith.constant dense<0.000000e+00> : vector<8xf32>
    %189 = vector.multi_reduction <add>, %188, %cst_64 [1] : vector<8x8xf32> to vector<8xf32>
    %190 = vector.shape_cast %189 : vector<8xf32> to vector<8x1xf32>
    %191 = vector.broadcast %185 : vector<8x1xf32> to vector<8x8xf32>
    %192 = arith.subf %164, %191 : vector<8x8xf32>
    %193 = math.exp %192 : vector<8x8xf32>
    %cst_65 = arith.constant dense<0.000000e+00> : vector<8xf32>
    %194 = vector.multi_reduction <add>, %193, %cst_65 [1] : vector<8x8xf32> to vector<8xf32>
    %195 = vector.shape_cast %194 : vector<8xf32> to vector<8x1xf32>
    %196 = arith.addf %190, %195 : vector<8x1xf32>
    %197 = arith.subf %175, %185 : vector<8x1xf32>
    %198 = math.exp %197 : vector<8x1xf32>
    %199 = arith.subf %196, %198 : vector<8x1xf32>
    %200 = math.log %199 : vector<8x1xf32>
    %201 = arith.addf %200, %185 : vector<8x1xf32>
    %202 = vector.shape_cast %201 : vector<8x1xf32> to vector<1x8x1xf32>
    %cst_66 = arith.constant dense<0.000000e+00> : vector<1xf32>
    %203 = vector.multi_reduction <add>, %202, %cst_66 [1, 2] : vector<1x8x1xf32> to vector<1xf32>
    %204 = vector.shape_cast %203 : vector<1xf32> to vector<1x1x1xf32>
    %205 = vector.extract %204[0, 0, 0] : f32 from vector<1x1x1xf32>
    %cst_67 = arith.constant dense<0xFF800000> : vector<8xf32>
    %206 = vector.multi_reduction <maximumf>, %167, %cst_67 [1] : vector<8x8xf32> to vector<8xf32>
    %207 = vector.shape_cast %206 : vector<8xf32> to vector<8x1xf32>
    %cst_68 = arith.constant dense<0xFF800000> : vector<8xf32>
    %208 = vector.multi_reduction <maximumf>, %170, %cst_68 [1] : vector<8x8xf32> to vector<8xf32>
    %209 = vector.shape_cast %208 : vector<8xf32> to vector<8x1xf32>
    %210 = arith.maximumf %207, %209 : vector<8x1xf32>
    %211 = vector.broadcast %210 : vector<8x1xf32> to vector<8x8xf32>
    %212 = arith.subf %167, %211 : vector<8x8xf32>
    %213 = math.exp %212 : vector<8x8xf32>
    %cst_69 = arith.constant dense<0.000000e+00> : vector<8xf32>
    %214 = vector.multi_reduction <add>, %213, %cst_69 [1] : vector<8x8xf32> to vector<8xf32>
    %215 = vector.shape_cast %214 : vector<8xf32> to vector<8x1xf32>
    %216 = vector.broadcast %210 : vector<8x1xf32> to vector<8x8xf32>
    %217 = arith.subf %170, %216 : vector<8x8xf32>
    %218 = math.exp %217 : vector<8x8xf32>
    %cst_70 = arith.constant dense<0.000000e+00> : vector<8xf32>
    %219 = vector.multi_reduction <add>, %218, %cst_70 [1] : vector<8x8xf32> to vector<8xf32>
    %220 = vector.shape_cast %219 : vector<8xf32> to vector<8x1xf32>
    %221 = arith.addf %215, %220 : vector<8x1xf32>
    %222 = arith.subf %180, %210 : vector<8x1xf32>
    %223 = math.exp %222 : vector<8x1xf32>
    %224 = arith.subf %221, %223 : vector<8x1xf32>
    %225 = math.log %224 : vector<8x1xf32>
    %226 = arith.addf %225, %210 : vector<8x1xf32>
    %227 = vector.shape_cast %226 : vector<8x1xf32> to vector<1x8x1xf32>
    %cst_71 = arith.constant dense<0.000000e+00> : vector<1xf32>
    %228 = vector.multi_reduction <add>, %227, %cst_71 [1, 2] : vector<1x8x1xf32> to vector<1xf32>
    %229 = vector.shape_cast %228 : vector<1xf32> to vector<1x1x1xf32>
    %230 = vector.extract %229[0, 0, 0] : f32 from vector<1x1x1xf32>
    %231 = arith.addf %205, %230 : f32
    %cst_72 = arith.constant 2.000000e+00 : f32
    %cst_73 = arith.constant 2.000000e+00 : f32
    %232 = arith.mulf %cst_72, %cst_73 : f32
    %233 = arith.mulf %142, %158 : vector<8x32xf32>
    %234 = vector.shape_cast %233 : vector<8x32xf32> to vector<1x8x32xf32>
    %cst_74 = arith.constant dense<0.000000e+00> : vector<1xf32>
    %235 = vector.multi_reduction <add>, %234, %cst_74 [1, 2] : vector<1x8x32xf32> to vector<1xf32>
    %236 = vector.shape_cast %235 : vector<1xf32> to vector<1x1x1xf32>
    %237 = vector.extract %236[0, 0, 0] : f32 from vector<1x1x1xf32>
    %238 = arith.mulf %232, %237 : f32
    %239 = arith.subf %231, %238 : f32
    %cst_75 = arith.constant 1.600000e+01 : f32
    %240 = arith.divf %239, %cst_75 : f32
    %c0_76 = arith.constant 0 : index
    %c0_77 = arith.constant 0 : index
    %241 = vector.load %arg8[%c0_76, %c0_77] : memref<3x128xf32, #tpu.memory_space<vmem>>, vector<3x128xf32>
    %c0_78 = arith.constant 0 : index
    %c0_79 = arith.constant 0 : index
    %242 = vector.load %arg10[%c0_78, %c0_79] : memref<1x128xf32, #tpu.memory_space<vmem>>, vector<1x128xf32>
    %cst_80 = arith.constant 0.000000e+00 : f32
    %243 = vector.broadcast %cst_80 : f32 to vector<3x128xf32>
    %244 = arith.addf %241, %243 : vector<3x128xf32>
    %cst_81 = arith.constant 1.000000e+00 : f32
    %245 = vector.broadcast %cst_81 : f32 to vector<3x128xf32>
    %246 = arith.addf %244, %245 : vector<3x128xf32>
    %247 = arith.mulf %244, %246 : vector<3x128xf32>
    %cst_82 = arith.constant 2.000000e+00 : f32
    %248 = vector.broadcast %cst_82 : f32 to vector<3x128xf32>
    %249 = arith.mulf %248, %241 : vector<3x128xf32>
    %cst_83 = arith.constant 1.000000e+00 : f32
    %250 = vector.broadcast %cst_83 : f32 to vector<3x128xf32>
    %251 = arith.addf %249, %250 : vector<3x128xf32>
    %252 = arith.divf %251, %247 : vector<3x128xf32>
    %cst_84 = arith.constant 2.000000e+00 : f32
    %253 = vector.broadcast %cst_84 : f32 to vector<3x128xf32>
    %254 = arith.addf %241, %253 : vector<3x128xf32>
    %cst_85 = arith.constant 1.000000e+00 : f32
    %255 = vector.broadcast %cst_85 : f32 to vector<3x128xf32>
    %256 = arith.addf %254, %255 : vector<3x128xf32>
    %257 = arith.mulf %254, %256 : vector<3x128xf32>
    %cst_86 = arith.constant 2.000000e+00 : f32
    %258 = vector.broadcast %cst_86 : f32 to vector<3x128xf32>
    %259 = arith.mulf %258, %241 : vector<3x128xf32>
    %cst_87 = arith.constant 5.000000e+00 : f32
    %260 = vector.broadcast %cst_87 : f32 to vector<3x128xf32>
    %261 = arith.addf %259, %260 : vector<3x128xf32>
    %262 = arith.divf %261, %257 : vector<3x128xf32>
    %263 = arith.mulf %247, %257 : vector<3x128xf32>
    %264 = arith.addf %252, %262 : vector<3x128xf32>
    %cst_88 = arith.constant 4.000000e+00 : f32
    %265 = vector.broadcast %cst_88 : f32 to vector<3x128xf32>
    %266 = arith.addf %241, %265 : vector<3x128xf32>
    %cst_89 = arith.constant 1.000000e+00 : f32
    %267 = vector.broadcast %cst_89 : f32 to vector<3x128xf32>
    %268 = arith.addf %266, %267 : vector<3x128xf32>
    %269 = arith.mulf %266, %268 : vector<3x128xf32>
    %cst_90 = arith.constant 2.000000e+00 : f32
    %270 = vector.broadcast %cst_90 : f32 to vector<3x128xf32>
    %271 = arith.mulf %270, %241 : vector<3x128xf32>
    %cst_91 = arith.constant 9.000000e+00 : f32
    %272 = vector.broadcast %cst_91 : f32 to vector<3x128xf32>
    %273 = arith.addf %271, %272 : vector<3x128xf32>
    %274 = arith.divf %273, %269 : vector<3x128xf32>
    %275 = arith.mulf %263, %269 : vector<3x128xf32>
    %276 = arith.addf %264, %274 : vector<3x128xf32>
    %cst_92 = arith.constant 6.000000e+00 : f32
    %277 = vector.broadcast %cst_92 : f32 to vector<3x128xf32>
    %278 = arith.addf %241, %277 : vector<3x128xf32>
    %cst_93 = arith.constant 1.000000e+00 : f32
    %279 = vector.broadcast %cst_93 : f32 to vector<3x128xf32>
    %280 = arith.addf %278, %279 : vector<3x128xf32>
    %281 = arith.mulf %278, %280 : vector<3x128xf32>
    %cst_94 = arith.constant 2.000000e+00 : f32
    %282 = vector.broadcast %cst_94 : f32 to vector<3x128xf32>
    %283 = arith.mulf %282, %241 : vector<3x128xf32>
    %cst_95 = arith.constant 1.300000e+01 : f32
    %284 = vector.broadcast %cst_95 : f32 to vector<3x128xf32>
    %285 = arith.addf %283, %284 : vector<3x128xf32>
    %286 = arith.divf %285, %281 : vector<3x128xf32>
    %287 = arith.mulf %275, %281 : vector<3x128xf32>
    %288 = arith.addf %276, %286 : vector<3x128xf32>
    %cst_96 = arith.constant 8.000000e+00 : f32
    %289 = vector.broadcast %cst_96 : f32 to vector<3x128xf32>
    %290 = arith.addf %241, %289 : vector<3x128xf32>
    %291 = math.log %290 : vector<3x128xf32>
    %cst_97 = arith.constant 1.000000e+00 : f32
    %292 = vector.broadcast %cst_97 : f32 to vector<3x128xf32>
    %293 = arith.divf %292, %290 : vector<3x128xf32>
    %294 = arith.mulf %293, %293 : vector<3x128xf32>
    %cst_98 = arith.constant -5.95238118E-4 : f32
    %295 = vector.broadcast %cst_98 : f32 to vector<3x128xf32>
    %296 = arith.mulf %294, %295 : vector<3x128xf32>
    %cst_99 = arith.constant 7.93650805E-4 : f32
    %297 = vector.broadcast %cst_99 : f32 to vector<3x128xf32>
    %298 = arith.addf %297, %296 : vector<3x128xf32>
    %299 = arith.mulf %294, %298 : vector<3x128xf32>
    %cst_100 = arith.constant -0.00277777785 : f32
    %300 = vector.broadcast %cst_100 : f32 to vector<3x128xf32>
    %301 = arith.addf %300, %299 : vector<3x128xf32>
    %302 = arith.mulf %294, %301 : vector<3x128xf32>
    %cst_101 = arith.constant 0.0833333358 : f32
    %303 = vector.broadcast %cst_101 : f32 to vector<3x128xf32>
    %304 = arith.addf %303, %302 : vector<3x128xf32>
    %305 = arith.mulf %293, %304 : vector<3x128xf32>
    %cst_102 = arith.constant 5.000000e-01 : f32
    %306 = vector.broadcast %cst_102 : f32 to vector<3x128xf32>
    %307 = arith.subf %290, %306 : vector<3x128xf32>
    %308 = arith.mulf %307, %291 : vector<3x128xf32>
    %309 = arith.subf %308, %290 : vector<3x128xf32>
    %cst_103 = arith.constant 0.918938517 : f32
    %310 = vector.broadcast %cst_103 : f32 to vector<3x128xf32>
    %311 = arith.addf %309, %310 : vector<3x128xf32>
    %312 = arith.addf %311, %305 : vector<3x128xf32>
    %313 = math.log %287 : vector<3x128xf32>
    %314 = arith.subf %312, %313 : vector<3x128xf32>
    %cst_104 = arith.constant 0.0039682542 : f32
    %315 = vector.broadcast %cst_104 : f32 to vector<3x128xf32>
    %316 = arith.mulf %294, %315 : vector<3x128xf32>
    %cst_105 = arith.constant -0.00833333377 : f32
    %317 = vector.broadcast %cst_105 : f32 to vector<3x128xf32>
    %318 = arith.addf %317, %316 : vector<3x128xf32>
    %319 = arith.mulf %294, %318 : vector<3x128xf32>
    %cst_106 = arith.constant 0.0833333358 : f32
    %320 = vector.broadcast %cst_106 : f32 to vector<3x128xf32>
    %321 = arith.addf %320, %319 : vector<3x128xf32>
    %322 = arith.mulf %294, %321 : vector<3x128xf32>
    %cst_107 = arith.constant 5.000000e-01 : f32
    %323 = vector.broadcast %cst_107 : f32 to vector<3x128xf32>
    %324 = arith.mulf %323, %293 : vector<3x128xf32>
    %325 = arith.subf %291, %324 : vector<3x128xf32>
    %326 = arith.subf %325, %322 : vector<3x128xf32>
    %327 = arith.subf %326, %288 : vector<3x128xf32>
    %328 = vector.broadcast %242 : vector<1x128xf32> to vector<3x128xf32>
    %329 = arith.subf %241, %328 : vector<3x128xf32>
    %330 = arith.mulf %329, %327 : vector<3x128xf32>
    %331 = arith.subf %330, %314 : vector<3x128xf32>
    %332 = vector.shape_cast %331 : vector<3x128xf32> to vector<1x3x128xf32>
    %cst_108 = arith.constant dense<0.000000e+00> : vector<1xf32>
    %333 = vector.multi_reduction <add>, %332, %cst_108 [1, 2] : vector<1x3x128xf32> to vector<1xf32>
    %334 = vector.shape_cast %333 : vector<1xf32> to vector<1x1x1xf32>
    %335 = vector.extract %334[0, 0, 0] : f32 from vector<1x1x1xf32>
    %c0_109 = arith.constant 0 : index
    %c0_110 = arith.constant 0 : index
    %336 = vector.load %arg9[%c0_109, %c0_110] : memref<3x128xf32, #tpu.memory_space<vmem>>, vector<3x128xf32>
    %c0_111 = arith.constant 0 : index
    %c0_112 = arith.constant 0 : index
    %337 = vector.load %arg11[%c0_111, %c0_112] : memref<1x128xf32, #tpu.memory_space<vmem>>, vector<1x128xf32>
    %cst_113 = arith.constant 0.000000e+00 : f32
    %338 = vector.broadcast %cst_113 : f32 to vector<3x128xf32>
    %339 = arith.addf %336, %338 : vector<3x128xf32>
    %cst_114 = arith.constant 1.000000e+00 : f32
    %340 = vector.broadcast %cst_114 : f32 to vector<3x128xf32>
    %341 = arith.addf %339, %340 : vector<3x128xf32>
    %342 = arith.mulf %339, %341 : vector<3x128xf32>
    %cst_115 = arith.constant 2.000000e+00 : f32
    %343 = vector.broadcast %cst_115 : f32 to vector<3x128xf32>
    %344 = arith.mulf %343, %336 : vector<3x128xf32>
    %cst_116 = arith.constant 1.000000e+00 : f32
    %345 = vector.broadcast %cst_116 : f32 to vector<3x128xf32>
    %346 = arith.addf %344, %345 : vector<3x128xf32>
    %347 = arith.divf %346, %342 : vector<3x128xf32>
    %cst_117 = arith.constant 2.000000e+00 : f32
    %348 = vector.broadcast %cst_117 : f32 to vector<3x128xf32>
    %349 = arith.addf %336, %348 : vector<3x128xf32>
    %cst_118 = arith.constant 1.000000e+00 : f32
    %350 = vector.broadcast %cst_118 : f32 to vector<3x128xf32>
    %351 = arith.addf %349, %350 : vector<3x128xf32>
    %352 = arith.mulf %349, %351 : vector<3x128xf32>
    %cst_119 = arith.constant 2.000000e+00 : f32
    %353 = vector.broadcast %cst_119 : f32 to vector<3x128xf32>
    %354 = arith.mulf %353, %336 : vector<3x128xf32>
    %cst_120 = arith.constant 5.000000e+00 : f32
    %355 = vector.broadcast %cst_120 : f32 to vector<3x128xf32>
    %356 = arith.addf %354, %355 : vector<3x128xf32>
    %357 = arith.divf %356, %352 : vector<3x128xf32>
    %358 = arith.mulf %342, %352 : vector<3x128xf32>
    %359 = arith.addf %347, %357 : vector<3x128xf32>
    %cst_121 = arith.constant 4.000000e+00 : f32
    %360 = vector.broadcast %cst_121 : f32 to vector<3x128xf32>
    %361 = arith.addf %336, %360 : vector<3x128xf32>
    %cst_122 = arith.constant 1.000000e+00 : f32
    %362 = vector.broadcast %cst_122 : f32 to vector<3x128xf32>
    %363 = arith.addf %361, %362 : vector<3x128xf32>
    %364 = arith.mulf %361, %363 : vector<3x128xf32>
    %cst_123 = arith.constant 2.000000e+00 : f32
    %365 = vector.broadcast %cst_123 : f32 to vector<3x128xf32>
    %366 = arith.mulf %365, %336 : vector<3x128xf32>
    %cst_124 = arith.constant 9.000000e+00 : f32
    %367 = vector.broadcast %cst_124 : f32 to vector<3x128xf32>
    %368 = arith.addf %366, %367 : vector<3x128xf32>
    %369 = arith.divf %368, %364 : vector<3x128xf32>
    %370 = arith.mulf %358, %364 : vector<3x128xf32>
    %371 = arith.addf %359, %369 : vector<3x128xf32>
    %cst_125 = arith.constant 6.000000e+00 : f32
    %372 = vector.broadcast %cst_125 : f32 to vector<3x128xf32>
    %373 = arith.addf %336, %372 : vector<3x128xf32>
    %cst_126 = arith.constant 1.000000e+00 : f32
    %374 = vector.broadcast %cst_126 : f32 to vector<3x128xf32>
    %375 = arith.addf %373, %374 : vector<3x128xf32>
    %376 = arith.mulf %373, %375 : vector<3x128xf32>
    %cst_127 = arith.constant 2.000000e+00 : f32
    %377 = vector.broadcast %cst_127 : f32 to vector<3x128xf32>
    %378 = arith.mulf %377, %336 : vector<3x128xf32>
    %cst_128 = arith.constant 1.300000e+01 : f32
    %379 = vector.broadcast %cst_128 : f32 to vector<3x128xf32>
    %380 = arith.addf %378, %379 : vector<3x128xf32>
    %381 = arith.divf %380, %376 : vector<3x128xf32>
    %382 = arith.mulf %370, %376 : vector<3x128xf32>
    %383 = arith.addf %371, %381 : vector<3x128xf32>
    %cst_129 = arith.constant 8.000000e+00 : f32
    %384 = vector.broadcast %cst_129 : f32 to vector<3x128xf32>
    %385 = arith.addf %336, %384 : vector<3x128xf32>
    %386 = math.log %385 : vector<3x128xf32>
    %cst_130 = arith.constant 1.000000e+00 : f32
    %387 = vector.broadcast %cst_130 : f32 to vector<3x128xf32>
    %388 = arith.divf %387, %385 : vector<3x128xf32>
    %389 = arith.mulf %388, %388 : vector<3x128xf32>
    %cst_131 = arith.constant -5.95238118E-4 : f32
    %390 = vector.broadcast %cst_131 : f32 to vector<3x128xf32>
    %391 = arith.mulf %389, %390 : vector<3x128xf32>
    %cst_132 = arith.constant 7.93650805E-4 : f32
    %392 = vector.broadcast %cst_132 : f32 to vector<3x128xf32>
    %393 = arith.addf %392, %391 : vector<3x128xf32>
    %394 = arith.mulf %389, %393 : vector<3x128xf32>
    %cst_133 = arith.constant -0.00277777785 : f32
    %395 = vector.broadcast %cst_133 : f32 to vector<3x128xf32>
    %396 = arith.addf %395, %394 : vector<3x128xf32>
    %397 = arith.mulf %389, %396 : vector<3x128xf32>
    %cst_134 = arith.constant 0.0833333358 : f32
    %398 = vector.broadcast %cst_134 : f32 to vector<3x128xf32>
    %399 = arith.addf %398, %397 : vector<3x128xf32>
    %400 = arith.mulf %388, %399 : vector<3x128xf32>
    %cst_135 = arith.constant 5.000000e-01 : f32
    %401 = vector.broadcast %cst_135 : f32 to vector<3x128xf32>
    %402 = arith.subf %385, %401 : vector<3x128xf32>
    %403 = arith.mulf %402, %386 : vector<3x128xf32>
    %404 = arith.subf %403, %385 : vector<3x128xf32>
    %cst_136 = arith.constant 0.918938517 : f32
    %405 = vector.broadcast %cst_136 : f32 to vector<3x128xf32>
    %406 = arith.addf %404, %405 : vector<3x128xf32>
    %407 = arith.addf %406, %400 : vector<3x128xf32>
    %408 = math.log %382 : vector<3x128xf32>
    %409 = arith.subf %407, %408 : vector<3x128xf32>
    %cst_137 = arith.constant 0.0039682542 : f32
    %410 = vector.broadcast %cst_137 : f32 to vector<3x128xf32>
    %411 = arith.mulf %389, %410 : vector<3x128xf32>
    %cst_138 = arith.constant -0.00833333377 : f32
    %412 = vector.broadcast %cst_138 : f32 to vector<3x128xf32>
    %413 = arith.addf %412, %411 : vector<3x128xf32>
    %414 = arith.mulf %389, %413 : vector<3x128xf32>
    %cst_139 = arith.constant 0.0833333358 : f32
    %415 = vector.broadcast %cst_139 : f32 to vector<3x128xf32>
    %416 = arith.addf %415, %414 : vector<3x128xf32>
    %417 = arith.mulf %389, %416 : vector<3x128xf32>
    %cst_140 = arith.constant 5.000000e-01 : f32
    %418 = vector.broadcast %cst_140 : f32 to vector<3x128xf32>
    %419 = arith.mulf %418, %388 : vector<3x128xf32>
    %420 = arith.subf %386, %419 : vector<3x128xf32>
    %421 = arith.subf %420, %417 : vector<3x128xf32>
    %422 = arith.subf %421, %383 : vector<3x128xf32>
    %423 = vector.broadcast %337 : vector<1x128xf32> to vector<3x128xf32>
    %424 = arith.subf %336, %423 : vector<3x128xf32>
    %425 = arith.mulf %424, %422 : vector<3x128xf32>
    %426 = arith.subf %425, %409 : vector<3x128xf32>
    %427 = vector.shape_cast %426 : vector<3x128xf32> to vector<1x3x128xf32>
    %cst_141 = arith.constant dense<0.000000e+00> : vector<1xf32>
    %428 = vector.multi_reduction <add>, %427, %cst_141 [1, 2] : vector<1x3x128xf32> to vector<1xf32>
    %429 = vector.shape_cast %428 : vector<1xf32> to vector<1x1x1xf32>
    %430 = vector.extract %429[0, 0, 0] : f32 from vector<1x1x1xf32>
    %431 = arith.addf %335, %430 : f32
    %c0_142 = arith.constant 0 : index
    %c0_143 = arith.constant 0 : index
    %432 = vector.load %arg12[%c0_142, %c0_143] : memref<1x128xf32, #tpu.memory_space<vmem>>, vector<1x128xf32>
    %cst_144 = arith.constant 0.000000e+00 : f32
    %433 = vector.broadcast %cst_144 : f32 to vector<1x128xf32>
    %434 = arith.addf %432, %433 : vector<1x128xf32>
    %cst_145 = arith.constant 1.000000e+00 : f32
    %435 = vector.broadcast %cst_145 : f32 to vector<1x128xf32>
    %436 = arith.addf %432, %435 : vector<1x128xf32>
    %437 = arith.mulf %434, %436 : vector<1x128xf32>
    %cst_146 = arith.constant 2.000000e+00 : f32
    %438 = vector.broadcast %cst_146 : f32 to vector<1x128xf32>
    %439 = arith.addf %432, %438 : vector<1x128xf32>
    %440 = arith.mulf %437, %439 : vector<1x128xf32>
    %cst_147 = arith.constant 3.000000e+00 : f32
    %441 = vector.broadcast %cst_147 : f32 to vector<1x128xf32>
    %442 = arith.addf %432, %441 : vector<1x128xf32>
    %443 = arith.mulf %440, %442 : vector<1x128xf32>
    %cst_148 = arith.constant 4.000000e+00 : f32
    %444 = vector.broadcast %cst_148 : f32 to vector<1x128xf32>
    %445 = arith.addf %432, %444 : vector<1x128xf32>
    %446 = arith.mulf %443, %445 : vector<1x128xf32>
    %cst_149 = arith.constant 5.000000e+00 : f32
    %447 = vector.broadcast %cst_149 : f32 to vector<1x128xf32>
    %448 = arith.addf %432, %447 : vector<1x128xf32>
    %449 = arith.mulf %446, %448 : vector<1x128xf32>
    %cst_150 = arith.constant 6.000000e+00 : f32
    %450 = vector.broadcast %cst_150 : f32 to vector<1x128xf32>
    %451 = arith.addf %432, %450 : vector<1x128xf32>
    %452 = arith.mulf %449, %451 : vector<1x128xf32>
    %cst_151 = arith.constant 7.000000e+00 : f32
    %453 = vector.broadcast %cst_151 : f32 to vector<1x128xf32>
    %454 = arith.addf %432, %453 : vector<1x128xf32>
    %455 = arith.mulf %452, %454 : vector<1x128xf32>
    %cst_152 = arith.constant 8.000000e+00 : f32
    %456 = vector.broadcast %cst_152 : f32 to vector<1x128xf32>
    %457 = arith.addf %432, %456 : vector<1x128xf32>
    %458 = arith.mulf %455, %457 : vector<1x128xf32>
    %cst_153 = arith.constant 9.000000e+00 : f32
    %459 = vector.broadcast %cst_153 : f32 to vector<1x128xf32>
    %460 = arith.addf %432, %459 : vector<1x128xf32>
    %461 = arith.mulf %458, %460 : vector<1x128xf32>
    %cst_154 = arith.constant 1.000000e+01 : f32
    %462 = vector.broadcast %cst_154 : f32 to vector<1x128xf32>
    %463 = arith.addf %432, %462 : vector<1x128xf32>
    %464 = math.log %463 : vector<1x128xf32>
    %cst_155 = arith.constant 1.000000e+00 : f32
    %465 = vector.broadcast %cst_155 : f32 to vector<1x128xf32>
    %466 = arith.divf %465, %463 : vector<1x128xf32>
    %467 = arith.mulf %466, %466 : vector<1x128xf32>
    %cst_156 = arith.constant -5.95238118E-4 : f32
    %468 = vector.broadcast %cst_156 : f32 to vector<1x128xf32>
    %469 = arith.mulf %467, %468 : vector<1x128xf32>
    %cst_157 = arith.constant 7.93650805E-4 : f32
    %470 = vector.broadcast %cst_157 : f32 to vector<1x128xf32>
    %471 = arith.addf %470, %469 : vector<1x128xf32>
    %472 = arith.mulf %467, %471 : vector<1x128xf32>
    %cst_158 = arith.constant -0.00277777785 : f32
    %473 = vector.broadcast %cst_158 : f32 to vector<1x128xf32>
    %474 = arith.addf %473, %472 : vector<1x128xf32>
    %475 = arith.mulf %467, %474 : vector<1x128xf32>
    %cst_159 = arith.constant 0.0833333358 : f32
    %476 = vector.broadcast %cst_159 : f32 to vector<1x128xf32>
    %477 = arith.addf %476, %475 : vector<1x128xf32>
    %478 = arith.mulf %466, %477 : vector<1x128xf32>
    %cst_160 = arith.constant 5.000000e-01 : f32
    %479 = vector.broadcast %cst_160 : f32 to vector<1x128xf32>
    %480 = arith.subf %463, %479 : vector<1x128xf32>
    %481 = arith.mulf %480, %464 : vector<1x128xf32>
    %482 = arith.subf %481, %463 : vector<1x128xf32>
    %cst_161 = arith.constant 0.918938517 : f32
    %483 = vector.broadcast %cst_161 : f32 to vector<1x128xf32>
    %484 = arith.addf %482, %483 : vector<1x128xf32>
    %485 = arith.addf %484, %478 : vector<1x128xf32>
    %486 = math.log %461 : vector<1x128xf32>
    %487 = arith.subf %485, %486 : vector<1x128xf32>
    %488 = vector.shape_cast %487 : vector<1x128xf32> to vector<1x1x128xf32>
    %cst_162 = arith.constant dense<0.000000e+00> : vector<1xf32>
    %489 = vector.multi_reduction <add>, %488, %cst_162 [1, 2] : vector<1x1x128xf32> to vector<1xf32>
    %490 = vector.shape_cast %489 : vector<1xf32> to vector<1x1x1xf32>
    %491 = vector.extract %490[0, 0, 0] : f32 from vector<1x1x1xf32>
    %cst_163 = arith.constant 4.800000e+01 : f32
    %492 = arith.mulf %cst_163, %491 : f32
    %493 = arith.addf %431, %492 : f32
    %cst_164 = arith.constant 0.699999988 : f32
    %494 = arith.mulf %cst_164, %126 : f32
    %495 = arith.addf %240, %494 : f32
    %496 = arith.addf %495, %493 : f32
    %c0_165 = arith.constant 0 : index
    %497 = memref.load %arg13[%c0_165] : memref<1xf32, #tpu.memory_space<smem>>
    memref.store %496, %arg13[%c0_165] : memref<1xf32, #tpu.memory_space<smem>>
    return
  }
}

</mosaic_0001>

<bundles_post_ra>
// kernel: tpu_custom_call.1
= control target key start
LH: loop header
LB: loop body
LE: loop exit
PB: predicated region body
PF: predicated region fallthrough
CT: control target
= control target key end

     0   :  { %18 = vsyncpa [#allocation3], 0  ;;  %s2098_s0 = inlined_call_operand.hbm [shape: f32[8,32], index: 0, kind: input, shape index: {}]   ;;  %s2099_s1 = inlined_call_operand.hbm [shape: f32[8,32], index: 1, kind: input, shape index: {}]   ;;  %s2100_s2 = inlined_call_operand.hbm [shape: f32[8,32], index: 2, kind: input, shape index: {}]   ;;  %s2101_s3 = inlined_call_operand.hbm [shape: f32[8,48], index: 3, kind: input, shape index: {}]   ;;  %s2102_s4 = inlined_call_operand.hbm [shape: f32[8,48], index: 4, kind: input, shape index: {}]   ;;  %s2103_s5 = inlined_call_operand.hbm [shape: f32[8,48], index: 5, kind: input, shape index: {}]   ;;  %s2104_s6 = inlined_call_operand.hbm [shape: f32[8,32], index: 6, kind: input, shape index: {}]   ;;  %s2105_s7 = inlined_call_operand.hbm [shape: f32[8,32], index: 7, kind: input, shape index: {}]   ;;  %s2106_s8 = inlined_call_operand.vmem [shape: f32[3,128], index: 8, kind: input, shape index: {}]   ;;  %s2107_s9 = inlined_call_operand.vmem [shape: f32[3,128], index: 9, kind: input, shape index: {}]   ;;  %s2108_s10 = inlined_call_operand.vmem [shape: f32[1,128], index: 10, kind: input, shape index: {}]   ;;  %s2109_s11 = inlined_call_operand.vmem [shape: f32[1,128], index: 11, kind: input, shape index: {}]   ;;  %s2110_s12 = inlined_call_operand.vmem [shape: f32[1,128], index: 12, kind: input, shape index: {}]   ;;  %s2111_s13 = inlined_call_operand.hbm [shape: f32[1], index: 13, kind: output, shape index: {}]  }
   0x1   :  { %19 = vsyncpa [#allocation6], 0 }
   0x2   :  { %20 = vsyncpa [#allocation9], 0 }
   0x3   :  { %21 = vsyncpa [#allocation12], 0 }
   0x4   :  { %22 = vsyncpa [#allocation15], 0  ;;  %s40_s27 = sshll.u32 %s2099_s1, 4  ;;  %s41_s27 = int_to_ptr.hbm [resolvable:$true] %s40_s27 }
   0x5   :  { %23 = vsyncpa [#allocation4], 0  ;;  %s1519_s28 = smov [#allocation5]   ;;  %s62_s15 = sshll.u32 %s2101_s3, 4  ;;  %s63_s15 = int_to_ptr.hbm [resolvable:$true] %s62_s15 }
   0x6   :  { %s42_s29 = sshll.u32 %s1519_s28, 4  ;;  %s1520_s16 = smov [#allocation8]   ;;  %s43_s29 = int_to_ptr.vmem [resolvable:$true] %s42_s29 }
   0x7   :  { %45 = dma.hbm_to_vmem [thread:$0]  %s41_s27, 128, %s43_s29, [#allocation6]  }
   0x8   :  { %s64_s17 = sshll.u32 %s1520_s16, 4  ;;  %s84_s20 = sshll.u32 %s2103_s5, 4  ;;  %s65_s17 = int_to_ptr.vmem [resolvable:$true] %s64_s17  ;;  %s85_s20 = int_to_ptr.hbm [resolvable:$true] %s84_s20 }
   0x9   :  { %67 = dma.hbm_to_vmem [thread:$0]  %s63_s15, 128, %s65_s17, [#allocation9]  }
   0xa   :  { %s29_s22 = sshll.u32 %s2098_s0, 4  ;;  %s1521_s23 = smov [#allocation11]   ;;  %s30_s22 = int_to_ptr.hbm [resolvable:$true] %s29_s22 }
   0xb   :  { %s86_s24 = sshll.u32 %s1521_s23, 4  ;;  %s1522_s3 = smov [#allocation2]   ;;  %s87_s24 = int_to_ptr.vmem [resolvable:$true] %s86_s24 }
   0xc   :  { %89 = dma.hbm_to_vmem [thread:$0]  %s85_s20, 128, %s87_s24, [#allocation12]  }
   0xd   :  { %s31_s25 = sshll.u32 %s1522_s3, 4  ;;  %s51_s28 = sshll.u32 %s2100_s2, 4  ;;  %s32_s25 = int_to_ptr.vmem [resolvable:$true] %s31_s25  ;;  %s52_s28 = int_to_ptr.hbm [resolvable:$true] %s51_s28 }
   0xe   :  { %34 = dma.hbm_to_vmem [thread:$0]  %s30_s22, 128, %s32_s25, [#allocation3]  }
   0xf   :  { %s73_s30 = sshll.u32 %s2102_s4, 4  ;;  %s1523_s14 = smov [#allocation7]   ;;  %s74_s30 = int_to_ptr.hbm [resolvable:$true] %s73_s30 }
  0x10   :  { %s53_s0 = sshll.u32 %s1523_s14, 4  ;;  %s1524_s15 = smov [#allocation10]   ;;  %s54_s0 = int_to_ptr.vmem [resolvable:$true] %s53_s0 }
  0x11   :  { %56 = dma.hbm_to_vmem [thread:$0]  %s52_s28, 128, %s54_s0, [#allocation6]  }
  0x12   :  { %s75_s16 = sshll.u32 %s1524_s15, 4  ;;  %s95_s19 = sshll.u32 %s2104_s6, 4  ;;  %s76_s16 = int_to_ptr.vmem [resolvable:$true] %s75_s16  ;;  %s96_s19 = int_to_ptr.hbm [resolvable:$true] %s95_s19 }
  0x13   :  { %78 = dma.hbm_to_vmem [thread:$0]  %s74_s30, 128, %s76_s16, [#allocation9]  }
  0x14   :  { %s106_s1 = sshll.u32 %s2105_s7, 4  ;;  %s1525_s21 = smov [#allocation13]   ;;  %s107_s1 = int_to_ptr.hbm [resolvable:$true] %s106_s1 }
  0x15   :  { %s97_s4 = sshll.u32 %s1525_s21, 4  ;;  %s1526_s22 = smov [#allocation14]   ;;  %s98_s4 = int_to_ptr.vmem [resolvable:$true] %s97_s4 }
  0x16   :  { %100 = dma.hbm_to_vmem [thread:$0]  %s96_s19, 128, %s98_s4, [#allocation12]  }
  0x17   :  { %s108_s23 = sshll.u32 %s1526_s22, 4  ;;  %s109_s23 = int_to_ptr.vmem [resolvable:$true] %s108_s23 }
  0x18   :  { %111 = dma.hbm_to_vmem [thread:$0]  %s107_s1, 128, %s109_s23, [#allocation15]  }
  0x19   :  { %1507 = dma.done.wait [#allocation3], 128  }
  0x1a   :  { %1508 = vsyncadd [#allocation3], 4294967168 }
  0x1b   :  { %1509 = dma.done.wait [#allocation6], 256  }
  0x1c   :  { %1510 = vsyncadd [#allocation6], 4294967040 }
  0x1d   :  { %1511 = dma.done.wait [#allocation9], 256  }
  0x1e   :  { %1512 = vsyncadd [#allocation9], 4294967040 }
  0x1f   :  { %1513 = dma.done.wait [#allocation12], 256  }
  0x20   :  { %1514 = vsyncadd [#allocation12], 4294967040 }
  0x21   :  { %1515 = dma.done.wait [#allocation15], 128  }
  0x22   :  { %1516 = vsyncadd [#allocation15], 4294967168  ;;  %vm155_vm0 = vcmask 261120   ;;  %v154_v0 = vld [vmem:[#allocation2] sm:$0xff]  ;;  %v1625_v1 = vld [vmem:[#allocation5] sm:$0xff]  ;;  %vm194_vm1 = vcmask 392192  }
  0x23   :  { %v156_v2 = vsel %vm155_vm0, %v154_v0, 0.0  ;;  %v233_v3 = vsel %vm155_vm0, %v1625_v1, 0.0  ;;  %v1630_v4 = vld [vmem:[#allocation8] sm:$0xff]  ;;  %v1527_v6 = vmov 256.0   ;;  %v1528_v8 = vmov 384.0   ;;  %v1645_v51 = vld [vmem:[#allocation7] sm:$0xff] }
  0x24   :  { %157 = vadd.xlane.f32.xlu0 %v156_v2  ;;  %234 = vadd.xlane.f32.xlu1 %v233_v3  ;;  %v195_v5 = vsel %vm194_vm1, %v1630_v4, 0.0  ;;  %1223 = vrcp.f32 %v1527_v6  ;;  %v297_v52 = vsel %vm155_vm0, %v1645_v51, 0.0 }
  0x25   :  { %1225 = vrcp.f32 %v1528_v8 }
  0x2a   :  { %v1224_v7 = vpop.eup %1223 }
  0x2b   :  { %v167_v9 = vmul.f32 256.0, %v1224_v7  ;;  %v1226_v11 = vpop.eup %1225  ;;  %vm171_vm2 = vweird.f32 %v1224_v7 }
  0x2c   :  { %196 = vadd.xlane.f32.xlu0 %v195_v5  ;;  %v206_v18 = vmul.f32 384.0, %v1226_v11  ;;  %vm210_vm3 = vweird.f32 %v1226_v11 }
  0x2d   :  { %v168_v10 = vsub.f32 1.0, %v167_v9 }
  0x2e   :  { %v207_v23 = vsub.f32 1.0, %v206_v18 }
  0x2f   :  { %v169_v17 = vmul.f32 %v1224_v7, %v168_v10 }
  0x30   :  { %v208_v31 = vmul.f32 %v1226_v11, %v207_v23 }
  0x31   :  { %v170_v22 = vadd.f32 %v1224_v7, %v169_v17 }
  0x32   :  { %v209_v35 = vadd.f32 %v1226_v11, %v208_v31 }
  0x33   :  { %v172_v30 = vsel %vm171_vm2, %v1224_v7, %v170_v22 }
  0x34   :  { %v211_v39 = vsel %vm210_vm3, %v1226_v11, %v209_v35  ;;  %298 = vadd.xlane.f32.xlu0 %v297_v52 }
  0x97   :  { %v158_v12 = vpop.xlane.xlu0 %157  ;;  %v235_v13 = vpop.xlane.xlu1 %234 }
  0x98   :  { %v159_v14 = vrot.slane %v158_v12, 4  ;;  %v236_v15 = vrot.slane %v235_v13, 4 }
  0x9a   :  { %v160_v16 = vadd.f32 %v159_v14, %v158_v12  ;;  %v237_v20 = vadd.f32 %v236_v15, %v235_v13 }
  0x9c   :  { %v161_v19 = vrot.slane %v160_v16, 2  ;;  %v238_v25 = vrot.slane %v237_v20, 2 }
  0x9e   :  { %v162_v21 = vadd.f32 %v161_v19, %v160_v16  ;;  %v239_v33 = vadd.f32 %v238_v25, %v237_v20 }
  0x9f   :  { %v197_v24 = vpop.xlane.xlu0 %196 }
  0xa0   :  { %v198_v26 = vrot.slane %v197_v24, 4  ;;  %v163_v27 = vrot.slane %v162_v21, 1  ;;  %v240_v37 = vrot.slane %v239_v33, 1 }
  0xa2   :  { %v199_v28 = vadd.f32 %v198_v26, %v197_v24  ;;  %v164_v29 = vadd.f32 %v163_v27, %v162_v21  ;;  %v241_v40 = vadd.f32 %v240_v37, %v239_v33 }
  0xa4   :  { %v200_v32 = vrot.slane %v199_v28, 2  ;;  %1159 = vpush %v164_v29 }
  0xa5   :  { %1161 = vpush %v172_v30 }
  0xa6   :  { %v201_v34 = vadd.f32 %v200_v32, %v199_v28 }
  0xa7   :  { %v299_v18 = vpop.xlane.xlu0 %298 }
  0xa8   :  { %v202_v36 = vrot.slane %v201_v34, 1  ;;  %v300_v20 = vrot.slane %v299_v18, 4 }
  0xaa   :  { %v203_v38 = vadd.f32 %v202_v36, %v201_v34  ;;  %v301_v21 = vadd.f32 %v300_v20, %v299_v18 }
  0xac   :  { %1163 = vpush %v203_v38  ;;  %v302_v24 = vrot.slane %v301_v21, 2 }
  0xad   :  { %1165 = vpush %v211_v39 }
  0xae   :  { %1167 = vpush %v241_v40  ;;  %v303_v27 = vadd.f32 %v302_v24, %v301_v21 }
  0xb0   :  { %v304_v30 = vrot.slane %v303_v27, 1 }
  0xb2   :  { %v305_v35 = vadd.f32 %v304_v30, %v303_v27  ;;  %v1673_v27 = vld [vmem:[#allocation11] sm:$0xff] }
  0xd5   :  { %s1160_s6 = spop %1159 }
  0xd6   :  { %s1634_s7 = spop %1161 }
  0xd7   :  { %s174_s24 = smul.f32 %s1634_s7, %s1160_s6 }
  0xd9   :  { %v175_v41 = vstv %s174_s24 }
  0xda   :  { %v176_v42 = vsub.f32 %v154_v0, %v175_v41 }
  0xdc   :  { %v177_v43 = vmul.f32 %v176_v42, %v176_v42 }
  0xdd   :  { %s1637_s3 = spop %1163 }
  0xde   :  { %s1639_s25 = spop %1165  ;;  %v178_v44 = vsel %vm155_vm0, %v177_v43, 0.0 }
  0xdf   :  { %s1168_s26 = spop %1167  ;;  %179 = vadd.xlane.f32.xlu1 %v178_v44  ;;  %s213_s29 = smul.f32 %s1639_s25, %s1637_s3  ;;  %v361_v44 = vld [vmem:[#allocation10] sm:$0xff] }
  0xe0   :  { %s251_s27 = smul.f32 %s1168_s26, %s1634_s7 }
  0xe1   :  { %v214_v38 = vstv %s213_s29 }
  0xe2   :  { %v252_v45 = vstv %s251_s27  ;;  %v1661_v41 = vsub.f32 %v1630_v4, %v214_v38 }
  0xe3   :  { %v253_v46 = vsub.f32 %v1625_v1, %v252_v45  ;;  %v362_v45 = vsel %vm194_vm1, %v361_v44, 0.0 }
  0xe4   :  { %363 = vadd.xlane.f32.xlu0 %v362_v45 }
  0xe5   :  { %v254_v47 = vmul.f32 %v253_v46, %v253_v46 }
  0xe7   :  { %v255_v48 = vsel %vm155_vm0, %v254_v47, 0.0 }
  0xe8   :  { %256 = vadd.xlane.f32.xlu2 %v255_v48 }
 0x152   :  { %v180_v49 = vpop.xlane.xlu1 %179 }
 0x153   :  { %v181_v50 = vmax.f32 %v180_v49, 1e-24 }
 0x155   :  { %1227 = vrsqrt.f32 %v181_v50  ;;  %vm188_vm5 = vweird.f32 %v181_v50 }
 0x15b   :  { %v1228_v53 = vpop.eup %1227  ;;  %v257_v54 = vpop.xlane.xlu2 %256 }
 0x15c   :  { %v183_v55 = vmul.f32 %v1228_v53, %v181_v50  ;;  %v258_v56 = vmax.f32 %v257_v54, 1e-24  ;;  %vm189_vm4 = vweird.f32 %v1228_v53 }
 0x15d   :  { %vm190_vm7 = vmor %vm188_vm5, %vm189_vm4 }
 0x15e   :  { %v184_v57 = vmul.f32 %v1228_v53, %v183_v55  ;;  %1229 = vrsqrt.f32 %v258_v56  ;;  %vm265_vm8 = vweird.f32 %v258_v56 }
 0x160   :  { %v185_v58 = vmul.f32 0.5, %v184_v57 }
 0x162   :  { %v186_v60 = vsub.f32 1.5, %v185_v58 }
 0x164   :  { %v1230_v59 = vpop.eup %1229  ;;  %v187_v63 = vmul.f32 %v1228_v53, %v186_v60 }
 0x165   :  { %v260_v61 = vmul.f32 %v1230_v59, %v258_v56  ;;  %vm266_vm6 = vweird.f32 %v1230_v59 }
 0x166   :  { %v191_v3 = vsel %vm190_vm7, %v1228_v53, %v187_v63  ;;  %vm267_vm9 = vmor %vm265_vm8, %vm266_vm6 }
 0x167   :  { %v261_v62 = vmul.f32 %v1230_v59, %v260_v61  ;;  %v1649_v6 = vmul.f32 %v191_v3, %v176_v42  ;;  %v216_v42 = vmul.f32 %v1661_v41, %v1661_v41 }
 0x169   :  { %v262_v0 = vmul.f32 0.5, %v261_v62  ;;  %v217_v43 = vsel %vm194_vm1, %v216_v42, 0.0 }
 0x16b   :  { %v263_v1 = vsub.f32 1.5, %v262_v0 }
 0x16d   :  { %v264_v2 = vmul.f32 %v1230_v59, %v263_v1  ;;  %v364_v1 = vpop.xlane.xlu0 %363 }
 0x16e   :  { %v365_v3 = vrot.slane %v364_v1, 4 }
 0x16f   :  { %v268_v5 = vsel %vm267_vm9, %v1230_v59, %v264_v2 }
 0x170   :  { %v269_v7 = vmul.f32 %v268_v5, %v253_v46  ;;  %v366_v5 = vadd.f32 %v365_v3, %v364_v1 }
 0x172   :  { %v270_v8 = vsub.f32 %v269_v7, %v1649_v6 }
 0x174   :  { %v271_v9 = vmul.f32 %v270_v8, %v270_v8  ;;  %v367_v8 = vrot.slane %v366_v5, 2 }
 0x176   :  { %v272_v10 = vsel %vm155_vm0, %v271_v9, 0.0 }
 0x177   :  { %273 = vadd.xlane.f32.xlu2 %v272_v10 }
 0x1ea   :  { %v274_v11 = vpop.xlane.xlu2 %273 }
 0x1eb   :  { %v275_v12 = vrot.slane %v274_v11, 4 }
 0x1ed   :  { %v276_v13 = vadd.f32 %v275_v12, %v274_v11  ;;  %v368_v11 = vadd.f32 %v367_v8, %v366_v5 }
 0x1ef   :  { %v277_v14 = vrot.slane %v276_v13, 2 }
 0x1f1   :  { %v278_v15 = vadd.f32 %v277_v14, %v276_v13  ;;  %v369_v14 = vrot.slane %v368_v11, 1 }
 0x1f3   :  { %v279_v16 = vrot.slane %v278_v15, 1 }
 0x1f5   :  { %v280_v17 = vadd.f32 %v279_v16, %v278_v15 }
 0x1f7   :  { %1169 = vpush %v280_v17 }
 0x228   :  { %s1170_s28 = spop %1169 }
 0x229   :  { %v282_v19 = vstv %s1170_s28  ;;  %s1530_s28 = smov [#allocation16]  }
 0x22a   :  { %1231 = vrsqrt.f32 %v282_v19  ;;  %vm290_vm10 = vcmp.eq.f32.partialorder %v282_v19, inf  ;;  %v293_v32 = vand.u32 2147483648, %v282_v19  ;;  %vm292_vm11 = vcmp.eq.f32.partialorder %v282_v19, 0.0 }
 0x230   :  { %v1232_v22 = vpop.eup %1231 }
 0x231   :  { %v284_v23 = vmul.f32 %v1232_v22, %v282_v19 }
 0x233   :  { %v285_v25 = vmul.f32 %v1232_v22, %v284_v23 }
 0x235   :  { %v286_v26 = vmul.f32 0.5, %v285_v25 }
 0x237   :  { %v287_v28 = vsub.f32 1.5, %v286_v26 }
 0x239   :  { %v288_v29 = vmul.f32 %v1232_v22, %v287_v28  ;;  %v427_v28 = vsel %vm194_vm1, %v1673_v27, 0.0 }
 0x23b   :  { %v289_v31 = vmul.f32 %v288_v29, %v282_v19 }
 0x23d   :  { %v291_v33 = vsel %vm290_vm10, %v282_v19, %v289_v31  ;;  %v370_v19 = vadd.f32 %v369_v14, %v368_v11  ;;  %v1689_v14 = vld [vmem:[#allocation13] sm:$0xff] }
 0x23e   :  { %v294_v34 = vsel %vm292_vm11, %v293_v32, %v291_v33 }
 0x23f   :  { %1171 = vpush %v294_v34 }
 0x240   :  { %1173 = vpush %v305_v35 }
 0x270   :  { %s1653_s5 = spop %1171 }
 0x271   :  { %s1174_s30 = spop %1173 }
 0x272   :  { %s315_s14 = smul.f32 %s1174_s30, %s1634_s7 }
 0x274   :  { %v316_v36 = vstv %s315_s14 }
 0x275   :  { %v317_v37 = vsub.f32 %v1645_v51, %v316_v36 }
 0x277   :  { %v318_v39 = vmul.f32 %v317_v37, %v317_v37 }
 0x279   :  { %v319_v40 = vsel %vm155_vm0, %v318_v39, 0.0 }
 0x27a   :  { %320 = vadd.xlane.f32.xlu1 %v319_v40 }
 0x282   :  { %218 = vadd.xlane.f32.xlu1 %v217_v43 }
 0x28a   :  { %428 = vadd.xlane.f32.xlu1 %v427_v28 }
 0x2ed   :  { %v321_v46 = vpop.xlane.xlu1 %320 }
 0x2ee   :  { %v322_v47 = vmax.f32 %v321_v46, 1e-24 }
 0x2f0   :  { %1233 = vrsqrt.f32 %v322_v47  ;;  %vm329_vm13 = vweird.f32 %v322_v47 }
 0x2f5   :  { %v219_v24 = vpop.xlane.xlu1 %218 }
 0x2f6   :  { %v1234_v48 = vpop.eup %1233  ;;  %v220_v25 = vmax.f32 %v219_v24, 1e-24 }
 0x2f7   :  { %v324_v49 = vmul.f32 %v1234_v48, %v322_v47  ;;  %vm330_vm12 = vweird.f32 %v1234_v48 }
 0x2f8   :  { %vm331_vm14 = vmor %vm329_vm13, %vm330_vm12  ;;  %vm227_vm4 = vweird.f32 %v220_v25 }
 0x2f9   :  { %v325_v50 = vmul.f32 %v1234_v48, %v324_v49 }
 0x2fb   :  { %v326_v51 = vmul.f32 0.5, %v325_v50 }
 0x2fd   :  { %v327_v4 = vsub.f32 1.5, %v326_v51 }
 0x2ff   :  { %v328_v52 = vmul.f32 %v1234_v48, %v327_v4 }
 0x301   :  { %v332_v53 = vsel %vm331_vm14, %v1234_v48, %v328_v52 }
 0x302   :  { %v333_v54 = vmul.f32 %v332_v53, %v317_v37 }
 0x304   :  { %v334_v55 = vsub.f32 %v333_v54, %v1649_v6 }
 0x306   :  { %v335_v56 = vmul.f32 %v334_v55, %v334_v55 }
 0x308   :  { %v336_v57 = vsel %vm155_vm0, %v335_v56, 0.0  ;;  %v429_v56 = vpop.xlane.xlu1 %428 }
 0x309   :  { %337 = vadd.xlane.f32.xlu2 %v336_v57 }
 0x37c   :  { %v338_v58 = vpop.xlane.xlu2 %337 }
 0x37d   :  { %v339_v59 = vrot.slane %v338_v58, 4 }
 0x37f   :  { %v340_v60 = vadd.f32 %v339_v59, %v338_v58 }
 0x381   :  { %v341_v61 = vrot.slane %v340_v60, 2 }
 0x383   :  { %v342_v62 = vadd.f32 %v341_v61, %v340_v60 }
 0x385   :  { %v343_v63 = vrot.slane %v342_v62, 1 }
 0x387   :  { %v344_v0 = vadd.f32 %v343_v63, %v342_v62 }
 0x389   :  { %1175 = vpush %v344_v0 }
 0x3ba   :  { %s1176_s0 = spop %1175 }
 0x3bb   :  { %v346_v2 = vstv %s1176_s0 }
 0x3bc   :  { %1235 = vrsqrt.f32 %v346_v2  ;;  %vm354_vm15 = vcmp.eq.f32.partialorder %v346_v2, inf  ;;  %v357_v16 = vand.u32 2147483648, %v346_v2  ;;  %vm356_vm2 = vcmp.eq.f32.partialorder %v346_v2, 0.0 }
 0x3bd   :  { %1237 = vrsqrt.f32 %v220_v25 }
 0x3c2   :  { %v1236_v7 = vpop.eup %1235 }
 0x3c3   :  { %v348_v6 = vmul.f32 %v1236_v7, %v346_v2  ;;  %v1238_v26 = vpop.eup %1237 }
 0x3c4   :  { %v222_v29 = vmul.f32 %v1238_v26, %v220_v25  ;;  %vm228_vm3 = vweird.f32 %v1238_v26 }
 0x3c5   :  { %v349_v9 = vmul.f32 %v1236_v7, %v348_v6  ;;  %vm229_vm6 = vmor %vm227_vm4, %vm228_vm3 }
 0x3c6   :  { %v223_v32 = vmul.f32 %v1238_v26, %v222_v29 }
 0x3c7   :  { %v350_v10 = vmul.f32 0.5, %v349_v9 }
 0x3c8   :  { %v224_v33 = vmul.f32 0.5, %v223_v32 }
 0x3c9   :  { %v351_v12 = vsub.f32 1.5, %v350_v10 }
 0x3ca   :  { %v225_v35 = vsub.f32 1.5, %v224_v33 }
 0x3cb   :  { %v352_v13 = vmul.f32 %v1236_v7, %v351_v12 }
 0x3cc   :  { %v226_v38 = vmul.f32 %v1238_v26, %v225_v35 }
 0x3cd   :  { %v353_v15 = vmul.f32 %v352_v13, %v346_v2 }
 0x3ce   :  { %v230_v43 = vsel %vm229_vm6, %v1238_v26, %v226_v38 }
 0x3cf   :  { %v355_v17 = vsel %vm354_vm15, %v346_v2, %v353_v15  ;;  %v1678_v45 = vmul.f32 %v230_v43, %v1661_v41  ;;  %v430_v41 = vrot.slane %v429_v56, 4  ;;  %v1691_v15 = vld [vmem:[#allocation14] sm:$0xff] }
 0x3d0   :  { %v358_v18 = vsel %vm356_vm2, %v357_v16, %v355_v17  ;;  %v492_v16 = vsel %vm155_vm0, %v1689_v14, 0.0  ;;  %v530_v17 = vsel %vm155_vm0, %v1691_v15, 0.0 }
 0x3d1   :  { %1177 = vpush %v358_v18  ;;  %v431_v58 = vadd.f32 %v430_v41, %v429_v56  ;;  %493 = vadd.xlane.f32.xlu1 %v492_v16 }
 0x3d2   :  { %1179 = vpush %v370_v19 }
 0x3d3   :  { %v432_v61 = vrot.slane %v431_v58, 2 }
 0x3d5   :  { %v433_v0 = vadd.f32 %v432_v61, %v431_v58 }
 0x3d7   :  { %v434_v3 = vrot.slane %v433_v0, 1 }
 0x3d9   :  { %v435_v9 = vadd.f32 %v434_v3, %v433_v0 }
 0x402   :  { %s1669_s15 = spop %1177 }
 0x403   :  { %s1180_s16 = spop %1179  ;;  %s360_s19 = sadd.f32 %s1669_s15, %s1653_s5 }
 0x404   :  { %s380_s17 = smul.f32 %s1180_s16, %s1639_s25 }
 0x406   :  { %v381_v20 = vstv %s380_s17 }
 0x407   :  { %v382_v21 = vsub.f32 %v361_v44, %v381_v20 }
 0x409   :  { %v383_v22 = vmul.f32 %v382_v21, %v382_v21 }
 0x40b   :  { %v384_v23 = vsel %vm194_vm1, %v383_v22, 0.0 }
 0x40c   :  { %385 = vadd.xlane.f32.xlu2 %v384_v23 }
 0x444   :  { %v494_v38 = vpop.xlane.xlu1 %493 }
 0x47f   :  { %v386_v30 = vpop.xlane.xlu2 %385 }
 0x480   :  { %v387_v31 = vmax.f32 %v386_v30, 1e-24 }
 0x482   :  { %1239 = vrsqrt.f32 %v387_v31  ;;  %vm394_vm7 = vweird.f32 %v387_v31 }
 0x488   :  { %v1240_v34 = vpop.eup %1239 }
 0x489   :  { %v389_v36 = vmul.f32 %v1240_v34, %v387_v31  ;;  %vm395_vm5 = vweird.f32 %v1240_v34 }
 0x48a   :  { %vm396_vm8 = vmor %vm394_vm7, %vm395_vm5  ;;  %vm667_vm7 = vcmask 64512  }
 0x48b   :  { %v390_v37 = vmul.f32 %v1240_v34, %v389_v36 }
 0x48d   :  { %v391_v39 = vmul.f32 0.5, %v390_v37 }
 0x48f   :  { %v392_v40 = vsub.f32 1.5, %v391_v39 }
 0x491   :  { %v393_v42 = vmul.f32 %v1240_v34, %v392_v40 }
 0x493   :  { %v397_v44 = vsel %vm396_vm8, %v1240_v34, %v393_v42  ;;  %v495_v42 = vrot.slane %v494_v38, 4 }
 0x494   :  { %v398_v46 = vmul.f32 %v397_v44, %v382_v21 }
 0x495   :  { %v496_v44 = vadd.f32 %v495_v42, %v494_v38 }
 0x496   :  { %v399_v47 = vsub.f32 %v398_v46, %v1678_v45 }
 0x498   :  { %v400_v48 = vmul.f32 %v399_v47, %v399_v47 }
 0x49a   :  { %v401_v49 = vsel %vm194_vm1, %v400_v48, 0.0  ;;  %v497_v48 = vrot.slane %v496_v44, 2 }
 0x49b   :  { %402 = vadd.xlane.f32.xlu0 %v401_v49 }
 0x50e   :  { %v403_v50 = vpop.xlane.xlu0 %402 }
 0x50f   :  { %v404_v51 = vrot.slane %v403_v50, 4 }
 0x511   :  { %v405_v4 = vadd.f32 %v404_v51, %v403_v50 }
 0x513   :  { %v406_v52 = vrot.slane %v405_v4, 2 }
 0x515   :  { %v407_v53 = vadd.f32 %v406_v52, %v405_v4  ;;  %v498_v4 = vadd.f32 %v497_v48, %v496_v44 }
 0x517   :  { %v408_v54 = vrot.slane %v407_v53, 1 }
 0x519   :  { %v409_v55 = vadd.f32 %v408_v54, %v407_v53 }
 0x51b   :  { %1181 = vpush %v409_v55  ;;  %v499_v55 = vrot.slane %v498_v4, 1 }
 0x54c   :  { %s1182_s18 = spop %1181 }
 0x54d   :  { %v411_v57 = vstv %s1182_s18 }
 0x54e   :  { %1241 = vrsqrt.f32 %v411_v57  ;;  %vm419_vm9 = vcmp.eq.f32.partialorder %v411_v57, inf  ;;  %v422_v7 = vand.u32 2147483648, %v411_v57  ;;  %vm421_vm10 = vcmp.eq.f32.partialorder %v411_v57, 0.0 }
 0x554   :  { %v1242_v59 = vpop.eup %1241 }
 0x555   :  { %v413_v60 = vmul.f32 %v1242_v59, %v411_v57 }
 0x557   :  { %v414_v62 = vmul.f32 %v1242_v59, %v413_v60  ;;  %v500_v60 = vadd.f32 %v499_v55, %v498_v4 }
 0x559   :  { %v415_v63 = vmul.f32 0.5, %v414_v62 }
 0x55b   :  { %v416_v1 = vsub.f32 1.5, %v415_v63 }
 0x55d   :  { %v417_v2 = vmul.f32 %v1242_v59, %v416_v1 }
 0x55f   :  { %v418_v5 = vmul.f32 %v417_v2, %v411_v57 }
 0x561   :  { %v420_v6 = vsel %vm419_vm9, %v411_v57, %v418_v5 }
 0x562   :  { %v423_v8 = vsel %vm421_vm10, %v422_v7, %v420_v6 }
 0x563   :  { %1183 = vpush %v423_v8 }
 0x564   :  { %1185 = vpush %v435_v9 }
 0x594   :  { %s1184_s2 = spop %1183 }
 0x595   :  { %s1684_s20 = sadd.f32 %s1184_s2, %s360_s19  ;;  %s1186_s1 = spop %1185 }
 0x596   :  { %s445_s21 = smul.f32 %s1186_s1, %s1639_s25 }
 0x598   :  { %v446_v10 = vstv %s445_s21 }
 0x599   :  { %v447_v11 = vsub.f32 %v1673_v27, %v446_v10 }
 0x59b   :  { %v448_v12 = vmul.f32 %v447_v11, %v447_v11 }
 0x59d   :  { %v449_v13 = vsel %vm194_vm1, %v448_v12, 0.0 }
 0x59e   :  { %450 = vadd.xlane.f32.xlu2 %v449_v13 }
 0x5a6   :  { %531 = vadd.xlane.f32.xlu2 %v530_v17 }
 0x611   :  { %v451_v18 = vpop.xlane.xlu2 %450 }
 0x612   :  { %v452_v19 = vmax.f32 %v451_v18, 1e-24 }
 0x614   :  { %1243 = vrsqrt.f32 %v452_v19  ;;  %vm459_vm12 = vweird.f32 %v452_v19 }
 0x619   :  { %v532_v39 = vpop.xlane.xlu2 %531 }
 0x61a   :  { %v1244_v20 = vpop.eup %1243  ;;  %v533_v43 = vrot.slane %v532_v39, 4 }
 0x61b   :  { %v454_v21 = vmul.f32 %v1244_v20, %v452_v19  ;;  %vm460_vm11 = vweird.f32 %v1244_v20 }
 0x61c   :  { %vm461_vm13 = vmor %vm459_vm12, %vm460_vm11 }
 0x61d   :  { %v455_v22 = vmul.f32 %v1244_v20, %v454_v21 }
 0x61f   :  { %v456_v23 = vmul.f32 0.5, %v455_v22 }
 0x621   :  { %v457_v24 = vsub.f32 1.5, %v456_v23 }
 0x623   :  { %v458_v25 = vmul.f32 %v1244_v20, %v457_v24 }
 0x625   :  { %v462_v26 = vsel %vm461_vm13, %v1244_v20, %v458_v25 }
 0x626   :  { %v463_v27 = vmul.f32 %v462_v26, %v447_v11 }
 0x628   :  { %v464_v28 = vsub.f32 %v463_v27, %v1678_v45  ;;  %v534_v45 = vadd.f32 %v533_v43, %v532_v39 }
 0x62a   :  { %v465_v29 = vmul.f32 %v464_v28, %v464_v28  ;;  %v535_v49 = vrot.slane %v534_v45, 2 }
 0x62c   :  { %v466_v30 = vsel %vm194_vm1, %v465_v29, 0.0  ;;  %v536_v53 = vadd.f32 %v535_v49, %v534_v45 }
 0x62d   :  { %467 = vadd.xlane.f32.xlu0 %v466_v30 }
 0x62e   :  { %v537_v57 = vrot.slane %v536_v53, 1 }
 0x630   :  { %v538_v61 = vadd.f32 %v537_v57, %v536_v53 }
 0x6a0   :  { %v468_v31 = vpop.xlane.xlu0 %467 }
 0x6a1   :  { %v469_v32 = vrot.slane %v468_v31, 4 }
 0x6a3   :  { %v470_v33 = vadd.f32 %v469_v32, %v468_v31 }
 0x6a5   :  { %v471_v34 = vrot.slane %v470_v33, 2 }
 0x6a7   :  { %v472_v35 = vadd.f32 %v471_v34, %v470_v33 }
 0x6a9   :  { %v473_v36 = vrot.slane %v472_v35, 1 }
 0x6ab   :  { %v474_v37 = vadd.f32 %v473_v36, %v472_v35 }
 0x6ad   :  { %1187 = vpush %v474_v37 }
 0x6de   :  { %s1188_s4 = spop %1187 }
 0x6df   :  { %v476_v40 = vstv %s1188_s4 }
 0x6e0   :  { %1245 = vrsqrt.f32 %v476_v40  ;;  %vm484_vm1 = vcmp.eq.f32.partialorder %v476_v40, inf  ;;  %v487_v41 = vand.u32 2147483648, %v476_v40  ;;  %vm486_vm14 = vcmp.eq.f32.partialorder %v476_v40, 0.0 }
 0x6e6   :  { %v1246_v46 = vpop.eup %1245 }
 0x6e7   :  { %v478_v47 = vmul.f32 %v1246_v46, %v476_v40 }
 0x6e9   :  { %v479_v50 = vmul.f32 %v1246_v46, %v478_v47 }
 0x6eb   :  { %v480_v51 = vmul.f32 0.5, %v479_v50 }
 0x6ed   :  { %v481_v52 = vsub.f32 1.5, %v480_v51 }
 0x6ef   :  { %v482_v54 = vmul.f32 %v1246_v46, %v481_v52 }
 0x6f1   :  { %v483_v56 = vmul.f32 %v482_v54, %v476_v40 }
 0x6f3   :  { %v485_v58 = vsel %vm484_vm1, %v476_v40, %v483_v56 }
 0x6f4   :  { %v488_v59 = vsel %vm486_vm14, %v487_v41, %v485_v58 }
 0x6f5   :  { %1189 = vpush %v488_v59 }
 0x6f6   :  { %1191 = vpush %v500_v60 }
 0x6f7   :  { %1193 = vpush %v538_v61 }
 0x726   :  { %s1699_s22 = spop %1189 }
 0x727   :  { %s490_s23 = sadd.f32 %s1699_s22, %s1684_s20  ;;  %s1192_s6 = spop %1191 }
 0x728   :  { %s510_s24 = smul.f32 %s1192_s6, %s1634_s7  ;;  %s1194_s3 = spop %1193 }
 0x729   :  { %s548_s25 = smul.f32 %s1194_s3, %s1634_s7 }
 0x72a   :  { %v511_v62 = vstv %s510_s24  ;;  %s1123_s2 = smul.f32 0.7, %s490_s23 }
 0x72b   :  { %v512_v63 = vsub.f32 %v1689_v14, %v511_v62  ;;  %v549_v0 = vstv %s548_s25  ;;  %s1133_s25 = sshll.u32 %s2111_s13, 4  ;;  %s1134_s25 = int_to_ptr.hbm [resolvable:$true] %s1133_s25 }
 0x72c   :  { %v550_v1 = vsub.f32 %v1691_v15, %v549_v0 }
 0x72d   :  { %v513_v2 = vmul.f32 %v512_v63, %v512_v63 }
 0x72e   :  { %v551_v5 = vmul.f32 %v550_v1, %v550_v1 }
 0x72f   :  { %v514_v3 = vsel %vm155_vm0, %v513_v2, 0.0  ;;  %v1739_v2 = vld [vmem:[%s2106_s8] sm:$0x7] }
 0x730   :  { %515 = vadd.xlane.f32.xlu0 %v514_v3  ;;  %v552_v7 = vsel %vm155_vm0, %v551_v5, 0.0  ;;  %v1744_v3 = vld [vmem:[%s2110_s12] sm:$0x1] }
 0x731   :  { %553 = vadd.xlane.f32.xlu1 %v552_v7  ;;  %v1747_v5 = vadd.f32 10.0, %v1744_v3  ;;  %v1750_v7 = vadd.f32 8.0, %v1739_v2 }
 0x7a3   :  { %v516_v6 = vpop.xlane.xlu0 %515 }
 0x7a4   :  { %v517_v8 = vmax.f32 %v516_v6, 1e-24  ;;  %v554_v9 = vpop.xlane.xlu1 %553 }
 0x7a5   :  { %v555_v10 = vmax.f32 %v554_v9, 1e-24  ;;  %v769_v9 = vadd.f32 1.0, %v1739_v2 }
 0x7a6   :  { %1247 = vrsqrt.f32 %v517_v8  ;;  %vm524_vm2 = vweird.f32 %v517_v8 }
 0x7a7   :  { %1249 = vrsqrt.f32 %v555_v10  ;;  %vm562_vm5 = vweird.f32 %v555_v10 }
 0x7ac   :  { %v1248_v11 = vpop.eup %1247 }
 0x7ad   :  { %v519_v12 = vmul.f32 %v1248_v11, %v517_v8  ;;  %v1250_v13 = vpop.eup %1249  ;;  %vm525_vm15 = vweird.f32 %v1248_v11  ;;  %v788_v8 = vadd.f32 2.0, %v1739_v2 }
 0x7ae   :  { %v557_v16 = vmul.f32 %v1250_v13, %v555_v10  ;;  %vm563_vm3 = vweird.f32 %v1250_v13  ;;  %vm526_vm4 = vmor %vm524_vm2, %vm525_vm15  ;;  %vm859_vm2 = vweird.f32 %v1750_v7 }
 0x7af   :  { %v520_v14 = vmul.f32 %v1248_v11, %v519_v12  ;;  %vm564_vm6 = vmor %vm562_vm5, %vm563_vm3  ;;  %v789_v10 = vadd.f32 1.0, %v788_v8 }
 0x7b0   :  { %v558_v17 = vmul.f32 %v1250_v13, %v557_v16 }
 0x7b1   :  { %v521_v15 = vmul.f32 0.5, %v520_v14  ;;  %v1758_v14 = vmul.f32 %v769_v9, %v1739_v2  ;;  %v1760_v16 = vmul.f32 %v789_v10, %v788_v8 }
 0x7b2   :  { %v559_v19 = vmul.f32 0.5, %v558_v17  ;;  %v830_v17 = vadd.f32 6.0, %v1739_v2 }
 0x7b3   :  { %v522_v18 = vsub.f32 1.5, %v521_v15  ;;  %vm778_vm11 = vweird.f32 %v1758_v14  ;;  %v782_v10 = vand.u32 2147483647, %v1758_v14  ;;  %vm797_vm14 = vweird.f32 %v1760_v16 }
 0x7b4   :  { %v560_v21 = vsub.f32 1.5, %v559_v19  ;;  %v1058_v19 = vadd.f32 1.0, %v1744_v3 }
 0x7b5   :  { %v523_v20 = vmul.f32 %v1248_v11, %v522_v18  ;;  %vm1843_vm1 = vcmp.eq.f32.partialorder %v782_v10, 8.507059e+37 }
 0x7b6   :  { %v561_v23 = vmul.f32 %v1250_v13, %v560_v21 }
 0x7b7   :  { %v527_v22 = vsel %vm526_vm4, %v1248_v11, %v523_v20  ;;  %v809_v11 = vadd.f32 4.0, %v1739_v2 }
 0x7b8   :  { %v528_v24 = vmul.f32 %v527_v22, %v512_v63  ;;  %v565_v25 = vsel %vm564_vm6, %v1250_v13, %v561_v23 }
 0x7b9   :  { %v566_v26 = vmul.f32 %v565_v25, %v550_v1  ;;  %v810_v15 = vadd.f32 1.0, %v809_v11  ;;  %v1059_v25 = vmul.f32 %v1058_v19, %v1744_v3  ;;  %v1836_v19 = vmul.f32 2.0, %v1739_v2 }
 0x7ba   :  { %1148 = vmatpush.xpose.msk.msra.mxu0 %vm155_vm0, %v528_v24  ;;  %1152 = vmatpush.xpose.msk.msra.mxu2 %vm155_vm0, %v528_v24  ;;  %v657_v39 = vmul.f32 %v528_v24, %v528_v24 }
 0x7bb   :  { %1150 = vmatpush.xpose.msk.msra.mxu1 %vm155_vm0, %v566_v26  ;;  %1154 = vmatpush.xpose.msk.msra.mxu3 %vm155_vm0, %v566_v26  ;;  %v744_v27 = vmul.f32 %v566_v26, %v528_v24  ;;  %v662_v43 = vmul.f32 %v566_v26, %v566_v26  ;;  %v1765_v20 = vmul.f32 %v810_v15, %v809_v11 }
 0x7bc   :  { %v658_v42 = vsel %vm155_vm0, %v657_v39, 0.0 }
 0x7bd   :  { %1149 = vmatmul.msk.f32.vlgmr.msra.gmra.mxu0 %vm155_vm0, %v528_v24  ;;  %1153 = vmatmul.msk.f32.vlgmr.msra.gmra.mxu2 %vm155_vm0, %v566_v26  ;;  %v663_v44 = vsel %vm155_vm0, %v662_v43, 0.0  ;;  %v745_v1 = vsel %vm155_vm0, %v744_v27, 0.0  ;;  %v831_v27 = vadd.f32 1.0, %v830_v17  ;;  %v1088_v43 = vand.u32 2147483647, %v1747_v5 }
 0x7be   :  { %1151 = vmatmul.msk.f32.vlgmr.msra.gmra.mxu1 %vm155_vm0, %v528_v24  ;;  %1155 = vmatmul.msk.f32.vlgmr.msra.gmra.mxu3 %vm155_vm0, %v566_v26  ;;  %v1060_v26 = vadd.f32 2.0, %v1744_v3  ;;  %vm1084_vm0 = vweird.f32 %v1747_v5  ;;  %vm818_vm6 = vweird.f32 %v1765_v20 }
 0x7bf   :  { %v1788_v39 = vmul.f32 %v831_v27, %v830_v17  ;;  %vm1089_vm10 = vcmp.eq.f32.partialorder %v1088_v43, 8.507059e+37 }
 0x83a   :  { %v587_v28 = vpop.f32.mrf.mxu0 }
 0x83b   :  { %v590_v29 = vmul.f32 2.0, %v587_v28  ;;  %v611_v30 = vpop.f32.mrf.mxu1 }
 0x83c   :  { %v614_v31 = vmul.f32 2.0, %v611_v30  ;;  %v1062_v30 = vadd.f32 3.0, %v1744_v3 }
 0x83d   :  { %v668_v32 = vsel %vm667_vm7, %v590_v29, -inf }
 0x83e   :  { %669 = vmax.xlane.f32.xlu2 %v668_v32  ;;  %v671_v33 = vsel %vm667_vm7, %v614_v31, -inf }
 0x83f   :  { %672 = vmax.xlane.f32.xlu0 %v671_v33 }
 0x840   :  { %v632_v34 = vpop.f32.mrf.mxu2 }
 0x841   :  { %v635_v35 = vmul.f32 2.0, %v632_v34  ;;  %v653_v36 = vpop.f32.mrf.mxu3 }
 0x842   :  { %v656_v37 = vmul.f32 2.0, %v653_v36 }
 0x843   :  { %v706_v38 = vsel %vm667_vm7, %v635_v35, -inf }
 0x844   :  { %707 = vmax.xlane.f32.xlu1 %v706_v38  ;;  %v709_v40 = vsel %vm667_vm7, %v656_v37, -inf  ;;  %v1090_v38 = vand.u32 2147483648, %v1747_v5 }
 0x846   :  { %710 = vmax.xlane.f32.xlu2 %v709_v40 }
 0x847   :  { %659 = vadd.xlane.f32.xlu0 %v658_v42 }
 0x84c   :  { %664 = vadd.xlane.f32.xlu1 %v663_v44 }
 0x8b1   :  { %v670_v45 = vpop.xlane.xlu2 %669 }
 0x8b2   :  { %v673_v46 = vpop.xlane.xlu0 %672 }
 0x8b3   :  { %v1723_v47 = vmax.f32 %v670_v45, %v673_v46  ;;  %v1066_v46 = vadd.f32 5.0, %v1744_v3 }
 0x8b5   :  { %v681_v48 = vsub.f32 %v614_v31, %v1723_v47  ;;  %v675_v49 = vsub.f32 %v590_v29, %v1723_v47  ;;  %v1061_v29 = vmul.f32 %v1060_v26, %v1059_v25 }
 0x8b7   :  { %v682_v50 = vmul.f32 1.442695, %v681_v48  ;;  %v676_v51 = vmul.f32 1.442695, %v675_v49  ;;  %v708_v4 = vpop.xlane.xlu1 %707  ;;  %v1063_v36 = vmul.f32 %v1062_v30, %v1061_v29  ;;  %v1091_v48 = vor.u32 1.1754944e-38, %v1090_v38 }
 0x8b8   :  { %v865_v38 = vand.u32 2147483648, %v1750_v7 }
 0x8b9   :  { %v711_v52 = vpop.xlane.xlu2 %710  ;;  %1251 = vpow2.f32 %v682_v50 }
 0x8ba   :  { %v1727_v53 = vmax.f32 %v708_v4, %v711_v52  ;;  %1253 = vpow2.f32 %v676_v51  ;;  %v660_v6 = vpop.xlane.xlu0 %659 }
 0x8bb   :  { %v661_v12 = vmul.f32 2.0, %v660_v6  ;;  %v1072_v6 = vadd.f32 8.0, %v1744_v3 }
 0x8bc   :  { %v719_v54 = vsub.f32 %v656_v37, %v1727_v53  ;;  %v713_v55 = vsub.f32 %v635_v35, %v1727_v53  ;;  %v1064_v37 = vadd.f32 4.0, %v1744_v3 }
 0x8bd   :  { %v688_v21 = vsub.f32 %v661_v12, %v1723_v47  ;;  %v784_v12 = vand.u32 2147483648, %v1758_v14 }
 0x8be   :  { %v720_v56 = vmul.f32 1.442695, %v719_v54  ;;  %v714_v57 = vmul.f32 1.442695, %v713_v55  ;;  %v1065_v45 = vmul.f32 %v1064_v37, %v1063_v36  ;;  %v1068_v54 = vadd.f32 6.0, %v1744_v3 }
 0x8bf   :  { %v1252_v41 = vpop.eup %1251  ;;  %v665_v13 = vpop.xlane.xlu1 %664  ;;  %v1778_v31 = vmul.f32 1.442695, %v688_v21  ;;  %v1158_v37 = vadd.f32 -0.5, %v1747_v5 }
 0x8c0   :  { %1255 = vpow2.f32 %v720_v56  ;;  %v1254_v58 = vpop.eup %1253  ;;  %v684_v59 = vsel %vm667_vm7, %v1252_v41, 0.0  ;;  %v1768_v22 = vmul.f32 2.0, %v665_v13  ;;  %v1067_v52 = vmul.f32 %v1066_v46, %v1065_v45 }
 0x8c1   :  { %1257 = vpow2.f32 %v714_v57  ;;  %685 = vadd.xlane.f32.xlu0 %v684_v59  ;;  %v678_v60 = vsel %vm667_vm7, %v1254_v58, 0.0  ;;  %v1807_v57 = vld [vmem:[%s2107_s9] sm:$0x7]  ;;  %v772_v46 = vadd.f32 1.0, %v1836_v19 }
 0x8c2   :  { %679 = vadd.xlane.f32.xlu2 %v678_v60  ;;  %1259 = vrcp.f32 %v1747_v5  ;;  %v726_v32 = vsub.f32 %v1768_v22, %v1727_v53  ;;  %v1815_v59 = vadd.f32 2.0, %v1807_v57  ;;  %v1069_v60 = vmul.f32 %v1068_v54, %v1067_v52 }
 0x8c3   :  { %1261 = vrcp.f32 %v1750_v7  ;;  %v1832_v15 = vadd.f32 1.0, %v1807_v57 }
 0x8c4   :  { %1263 = vrcp.f32 %v1758_v14 }
 0x8c5   :  { %1265 = vrcp.f32 %v1760_v16  ;;  %v1937_v22 = vmul.f32 %v1832_v15, %v1807_v57 }
 0x8c6   :  { %v1256_v61 = vpop.eup %1255  ;;  %1267 = vrcp.f32 %v1765_v20 }
 0x8c7   :  { %v1258_v62 = vpop.eup %1257  ;;  %v722_v63 = vsel %vm667_vm7, %v1256_v61, 0.0  ;;  %1269 = vrcp.f32 %v1788_v39  ;;  %v1070_v61 = vadd.f32 7.0, %v1744_v3 }
 0x8c8   :  { %v716_v0 = vsel %vm667_vm7, %v1258_v62, 0.0  ;;  %v1260_v18 = vpop.eup %1259  ;;  %1271 = vlog2.f32 %v1747_v5 }
 0x8c9   :  { %717 = vadd.xlane.f32.xlu1 %v716_v0  ;;  %v1080_v23 = vmul.f32 %v1260_v18, %v1747_v5  ;;  %v1772_v24 = vpop.eup %1261  ;;  %vm1085_vm8 = vweird.f32 %v1260_v18 }
 0x8ca   :  { %723 = vadd.xlane.f32.xlu2 %v722_v63  ;;  %v855_v34 = vmul.f32 %v1772_v24, %v1750_v7  ;;  %v1784_v35 = vpop.eup %1263  ;;  %vm1086_vm9 = vmor %vm1084_vm0, %vm1085_vm8  ;;  %vm860_vm3 = vweird.f32 %v1772_v24 }
 0x8cb   :  { %v1081_v28 = vsub.f32 1.0, %v1080_v23  ;;  %v1790_v40 = vpop.eup %1265  ;;  %v774_v49 = vmul.f32 %v1784_v35, %v1758_v14  ;;  %vm779_vm12 = vweird.f32 %v1784_v35  ;;  %vm1902_vm8 = vmor %vm859_vm2, %vm860_vm3  ;;  %vm900_vm2 = vcmask 1042432  }
 0x8cc   :  { %v1794_v44 = vpop.eup %1267  ;;  %v793_v51 = vmul.f32 %v1790_v40, %v1760_v16  ;;  %v856_v4 = vsub.f32 1.0, %v855_v34  ;;  %vm1824_vm13 = vmor %vm778_vm11, %vm779_vm12  ;;  %vm798_vm15 = vweird.f32 %v1790_v40  ;;  %vm1110_vm11 = vcmask 1040384  }
 0x8cd   :  { %v1082_v33 = vmul.f32 %v1260_v18, %v1081_v28  ;;  %v775_v56 = vsub.f32 1.0, %v774_v49  ;;  %v814_v58 = vmul.f32 %v1794_v44, %v1765_v20  ;;  %v1838_v23 = vpop.eup %1269  ;;  %vm1862_vm4 = vmor %vm797_vm14, %vm798_vm15  ;;  %vm819_vm7 = vweird.f32 %v1794_v44 }
 0x8ce   :  { %v794_v0 = vsub.f32 1.0, %v793_v51  ;;  %v857_v13 = vmul.f32 %v1772_v24, %v856_v4  ;;  %v1272_v29 = vpop.eup %1271  ;;  %v835_v51 = vmul.f32 %v1838_v23, %v1788_v39  ;;  %vm1883_vm0 = vmor %vm818_vm6, %vm819_vm7  ;;  %vm695_vm15 = vcmask 7168  }
 0x8cf   :  { %v1083_v42 = vadd.f32 %v1260_v18, %v1082_v33  ;;  %v776_v62 = vmul.f32 %v1784_v35, %v775_v56  ;;  %v815_v21 = vsub.f32 1.0, %v814_v58  ;;  %v801_v33 = vand.u32 2147483647, %v1760_v16 }
 0x8d0   :  { %v795_v28 = vmul.f32 %v1790_v40, %v794_v0  ;;  %v1078_v34 = vmul.f32 0.6931472, %v1272_v29  ;;  %v836_v10 = vsub.f32 1.0, %v835_v51  ;;  %v812_v29 = vadd.f32 9.0, %v1836_v19 }
 0x8d1   :  { %v1087_v50 = vsel %vm1086_vm9, %v1260_v18, %v1083_v42  ;;  %v777_v8 = vadd.f32 %v1784_v35, %v776_v62  ;;  %v1074_v18 = vadd.f32 9.0, %v1744_v3  ;;  %v785_v3 = vor.u32 1.1754944e-38, %v784_v12 }
 0x8d2   :  { %746 = vadd.xlane.f32.xlu2 %v745_v1  ;;  %v1802_v55 = vsel %vm1089_vm10, %v1091_v48, %v1087_v50  ;;  %v1071_v1 = vmul.f32 %v1070_v61, %v1069_v60  ;;  %v1103_v43 = vmul.f32 %v1158_v37, %v1078_v34  ;;  %v796_v45 = vadd.f32 %v1790_v40, %v795_v28 }
 0x8d3   :  { %v1094_v41 = vmul.f32 %v1802_v55, %v1802_v55  ;;  %v781_v26 = vsel %vm1824_vm13, %v1784_v35, %v777_v8  ;;  %v803_v35 = vand.u32 2147483648, %v1760_v16  ;;  %v816_v50 = vmul.f32 %v1794_v44, %v815_v21 }
 0x8d4   :  { %v1073_v17 = vmul.f32 %v1072_v6, %v1071_v1  ;;  %v786_v48 = vsel %vm1843_vm1, %v785_v3, %v781_v26  ;;  %v1104_v52 = vsub.f32 %v1103_v43, %v1747_v5  ;;  %vm1870_vm5 = vcmp.eq.f32.partialorder %v801_v33, 8.507059e+37 }
 0x8d5   :  { %v1095_v63 = vmul.f32 -0.0005952381, %v1094_v41  ;;  %v804_v56 = vor.u32 1.1754944e-38, %v803_v35  ;;  %v817_v58 = vadd.f32 %v1794_v44, %v816_v50  ;;  %v800_v5 = vsel %vm1862_vm4, %v1790_v40, %v796_v45 }
 0x8d6   :  { %v1075_v30 = vmul.f32 %v1074_v18, %v1073_v17  ;;  %v1105_v61 = vadd.f32 0.9189385, %v1104_v52  ;;  %v858_v1 = vadd.f32 %v1772_v24, %v857_v13  ;;  %v787_v9 = vmul.f32 %v786_v48, %v772_v46 }
 0x8d7   :  { %v1096_v11 = vadd.f32 0.0007936508, %v1095_v63  ;;  %v824_v63 = vand.u32 2147483648, %v1765_v20  ;;  %v805_v40 = vsel %vm1870_vm5, %v804_v56, %v800_v5  ;;  %v837_v21 = vmul.f32 %v1838_v23, %v836_v10 }
 0x8d8   :  { %1273 = vlog2.f32 %v1075_v30  ;;  %vm839_vm9 = vweird.f32 %v1788_v39  ;;  %vm840_vm10 = vweird.f32 %v1838_v23  ;;  %v862_v27 = vsel %vm1902_vm8, %v1772_v24, %v858_v1 }
 0x8d9   :  { %v1097_v25 = vmul.f32 %v1096_v11, %v1094_v41  ;;  %v821_v11 = vsel %vm1883_vm0, %v1794_v44, %v817_v58  ;;  %v825_v12 = vor.u32 1.1754944e-38, %v824_v63  ;;  %v843_v44 = vand.u32 2147483647, %v1788_v39  ;;  %vm1917_vm13 = vmor %vm839_vm9, %vm840_vm10 }
 0x8da   :  { %v838_v26 = vadd.f32 %v1838_v23, %v837_v21  ;;  %1275 = vlog2.f32 %v1750_v7  ;;  %v866_v3 = vor.u32 1.1754944e-38, %v865_v38  ;;  %v934_v34 = vadd.f32 1.0, %v1815_v59 }
 0x8db   :  { %v1098_v36 = vadd.f32 -0.0027777778, %v1097_v25  ;;  %1277 = vpow2.f32 %v1778_v31  ;;  %vm1929_vm14 = vcmp.eq.f32.partialorder %v843_v44, 8.507059e+37  ;;  %v1156_v48 = vadd.f32 -0.5, %v1750_v7 }
 0x8dc   :  { %v842_v35 = vsel %vm1917_vm13, %v1838_v23, %v838_v26  ;;  %v833_v23 = vadd.f32 13.0, %v1836_v19  ;;  %vm923_vm3 = vweird.f32 %v1937_v22 }
 0x8dd   :  { %v1099_v42 = vmul.f32 %v1098_v36, %v1094_v41  ;;  %v807_v41 = vmul.f32 %v1760_v16, %v1758_v14  ;;  %v791_v14 = vadd.f32 5.0, %v1836_v19  ;;  %v822_v16 = vand.u32 2147483647, %v1765_v20 }
 0x8de   :  { %v1274_v0 = vpop.eup %1273  ;;  %v727_v36 = vmul.f32 1.442695, %v726_v32 }
 0x8df   :  { %v1100_v4 = vadd.f32 0.083333336, %v1099_v42  ;;  %v1108_v8 = vmul.f32 0.6931472, %v1274_v0  ;;  %v828_v17 = vmul.f32 %v1765_v20, %v807_v41  ;;  %vm823_vm12 = vcmp.eq.f32.partialorder %v822_v16, 8.507059e+37 }
 0x8e0   :  { %v845_v20 = vand.u32 2147483648, %v1788_v39  ;;  %v806_v28 = vmul.f32 %v805_v40, %v791_v14  ;;  %v826_v33 = vsel %vm823_vm12, %v825_v12, %v821_v11  ;;  %v1276_v32 = vpop.eup %1275  ;;  %1279 = vpow2.f32 %v727_v36 }
 0x8e1   :  { %v1101_v60 = vmul.f32 %v1100_v4, %v1802_v55  ;;  %v863_v55 = vand.u32 2147483647, %v1750_v7  ;;  %v849_v38 = vmul.f32 %v1788_v39, %v828_v17  ;;  %v827_v46 = vmul.f32 %v826_v33, %v812_v29  ;;  %v1278_v56 = vpop.eup %1277 }
 0x8e2   :  { %v846_v24 = vor.u32 1.1754944e-38, %v845_v20  ;;  %v808_v45 = vadd.f32 %v806_v28, %v787_v9  ;;  %v1941_v4 = vmul.f32 %v934_v34, %v1815_v59  ;;  %v853_v54 = vmul.f32 0.6931472, %v1276_v32 }
 0x8e3   :  { %v1106_v6 = vadd.f32 %v1105_v61, %v1101_v60  ;;  %vm864_vm1 = vcmp.eq.f32.partialorder %v863_v55, 8.507059e+37  ;;  %1281 = vlog2.f32 %v849_v38  ;;  %v1221_v55 = vld [vmem:[%s2108_s10] ss:$0 sm:$0xff]  ;;  %v975_v36 = vadd.f32 6.0, %v1807_v57 }
 0x8e4   :  { %v867_v37 = vsel %vm864_vm1, %v866_v3, %v862_v27  ;;  %v847_v52 = vsel %vm1929_vm14, %v846_v24, %v842_v35  ;;  %v829_v61 = vadd.f32 %v827_v46, %v808_v45  ;;  %v878_v5 = vmul.f32 %v1156_v48, %v853_v54 }
 0x8e5   :  { %v1109_v18 = vsub.f32 %v1106_v6, %v1108_v8  ;;  %v869_v31 = vmul.f32 %v867_v37, %v867_v37  ;;  %v890_v58 = vmul.f32 0.5, %v867_v37  ;;  %1283 = vrcp.f32 %v1937_v22 }
 0x8e6   :  { %v848_v19 = vmul.f32 %v847_v52, %v833_v23  ;;  %1285 = vrcp.f32 %v1941_v4  ;;  %v879_v14 = vsub.f32 %v878_v5, %v1750_v7  ;;  %v1280_v6 = vpop.eup %1279  ;;  %v954_v8 = vadd.f32 4.0, %v1807_v57 }
 0x8e7   :  { %v1111_v25 = vsel %vm1110_vm11, %v1109_v18, 0.0  ;;  %v870_v50 = vmul.f32 -0.0005952381, %v869_v31  ;;  %v885_v51 = vmul.f32 0.003968254, %v869_v31  ;;  %v891_v1 = vsub.f32 %v853_v54, %v890_v58 }
 0x8e8   :  { %1112 = vadd.xlane.f32.xlu2 %v1111_v25  ;;  %v850_v40 = vadd.f32 %v848_v19, %v829_v61  ;;  %v955_v18 = vadd.f32 1.0, %v954_v8  ;;  %v880_v44 = vadd.f32 0.9189385, %v879_v14  ;;  %v897_v25 = vsub.f32 %v1739_v2, %v1221_v55 }
 0x8e9   :  { %v871_v41 = vadd.f32 0.0007936508, %v870_v50  ;;  %v886_v15 = vadd.f32 -0.008333334, %v885_v51  ;;  %v1282_v9 = vpop.eup %1281  ;;  %v1973_v23 = vmul.f32 2.0, %v1807_v57  ;;  %v929_v52 = vand.u32 2147483648, %v1937_v22 }
 0x8ea   :  { %v1957_v28 = vmul.f32 %v955_v18, %v954_v8  ;;  %v883_v3 = vmul.f32 0.6931472, %v1282_v9  ;;  %vm942_vm5 = vweird.f32 %v1941_v4  ;;  %v946_v58 = vand.u32 2147483647, %v1941_v4 }
 0x8eb   :  { %v872_v62 = vmul.f32 %v871_v41, %v869_v31  ;;  %v887_v59 = vmul.f32 %v886_v15, %v869_v31  ;;  %v1952_v17 = vpop.eup %1283  ;;  %v930_v14 = vor.u32 1.1754944e-38, %v929_v52 }
 0x8ec   :  { %v1954_v21 = vpop.eup %1285  ;;  %v919_v34 = vmul.f32 %v1952_v17, %v1937_v22  ;;  %vm924_vm4 = vweird.f32 %v1952_v17  ;;  %vm2015_vm9 = vcmp.eq.f32.partialorder %v946_v58, 8.507059e+37  ;;  %vm963_vm10 = vweird.f32 %v1957_v28 }
 0x8ed   :  { %v873_v0 = vadd.f32 -0.0027777778, %v872_v62  ;;  %v888_v16 = vadd.f32 0.083333336, %v887_v59  ;;  %v938_v2 = vmul.f32 %v1954_v21, %v1941_v4  ;;  %vm943_vm6 = vweird.f32 %v1954_v21  ;;  %vm1997_vm7 = vmor %vm923_vm3, %vm924_vm4 }
 0x8ee   :  { %vm2011_vm8 = vmor %vm942_vm5, %vm943_vm6 }
 0x8ef   :  { %v874_v11 = vmul.f32 %v873_v0, %v869_v31  ;;  %v889_v12 = vmul.f32 %v888_v16, %v869_v31  ;;  %v920_v31 = vsub.f32 1.0, %v919_v34  ;;  %v939_v46 = vsub.f32 1.0, %v938_v2 }
 0x8f1   :  { %v875_v7 = vadd.f32 0.083333336, %v874_v11  ;;  %v892_v20 = vsub.f32 %v891_v1, %v889_v12  ;;  %v921_v51 = vmul.f32 %v1952_v17, %v920_v31  ;;  %v940_v41 = vmul.f32 %v1954_v21, %v939_v46 }
 0x8f2   :  { %v969_v11 = vand.u32 2147483648, %v1957_v28  ;;  %v957_v46 = vadd.f32 9.0, %v1973_v23 }
 0x8f3   :  { %v876_v30 = vmul.f32 %v875_v7, %v867_v37  ;;  %v893_v33 = vsub.f32 %v892_v20, %v850_v40  ;;  %v922_v5 = vadd.f32 %v1952_v17, %v921_v51  ;;  %v941_v62 = vadd.f32 %v1954_v21, %v940_v41 }
 0x8f4   :  { %v967_v40 = vand.u32 2147483647, %v1957_v28  ;;  %v970_v34 = vor.u32 1.1754944e-38, %v969_v11 }
 0x8f5   :  { %v881_v35 = vadd.f32 %v880_v44, %v876_v30  ;;  %v898_v42 = vmul.f32 %v897_v25, %v893_v33  ;;  %v945_v12 = vsel %vm2011_vm8, %v1954_v21, %v941_v62 }
 0x8f6   :  { %vm2050_vm14 = vcmp.eq.f32.partialorder %v967_v40, 8.507059e+37 }
 0x8f7   :  { %v884_v38 = vsub.f32 %v881_v35, %v883_v3 }
 0x8f9   :  { %v899_v45 = vsub.f32 %v898_v42, %v884_v38 }
 0x934   :  { %v686_v43 = vpop.xlane.xlu0 %685 }
 0x935   :  { %v680_v49 = vpop.xlane.xlu2 %679 }
 0x936   :  { %v687_v39 = vadd.f32 %v686_v43, %v680_v49  ;;  %v976_v43 = vadd.f32 1.0, %v975_v36 }
 0x938   :  { %v691_v60 = vsub.f32 %v687_v39, %v1278_v56  ;;  %v1967_v32 = vmul.f32 %v976_v43, %v975_v36  ;;  %v927_v39 = vand.u32 2147483647, %v1937_v22  ;;  %v901_v56 = vsel %vm900_vm2, %v899_v45, 0.0 }
 0x93a   :  { %1287 = vlog2.f32 %v691_v60  ;;  %vm2005_vm0 = vcmp.eq.f32.partialorder %v927_v39, 8.507059e+37 }
 0x93c   :  { %v718_v63 = vpop.xlane.xlu1 %717 }
 0x93d   :  { %v724_v10 = vpop.xlane.xlu2 %723 }
 0x93e   :  { %v725_v13 = vadd.f32 %v724_v10, %v718_v63  ;;  %v917_v63 = vadd.f32 1.0, %v1973_v23  ;;  %v926_v10 = vsel %vm1997_vm7, %v1952_v17, %v922_v5 }
 0x93f   :  { %v931_v21 = vsel %vm2005_vm0, %v930_v14, %v926_v10 }
 0x940   :  { %v1288_v26 = vpop.eup %1287  ;;  %v729_v27 = vsub.f32 %v725_v13, %v1280_v6  ;;  %v932_v43 = vmul.f32 %v931_v21, %v917_v63 }
 0x941   :  { %v693_v29 = vmul.f32 0.6931472, %v1288_v26  ;;  %v936_v26 = vadd.f32 5.0, %v1973_v23 }
 0x942   :  { %1289 = vlog2.f32 %v729_v27  ;;  %v952_v27 = vmul.f32 %v1941_v4, %v1937_v22  ;;  %v988_v22 = vand.u32 2147483647, %v1967_v32 }
 0x943   :  { %v694_v24 = vadd.f32 %v693_v29, %v1723_v47  ;;  %1291 = vrcp.f32 %v1957_v28  ;;  %v1970_v47 = vadd.f32 8.0, %v1807_v57 }
 0x944   :  { %1293 = vrcp.f32 %v1967_v32  ;;  %v973_v38 = vmul.f32 %v1957_v28, %v952_v27  ;;  %vm989_vm7 = vcmp.eq.f32.partialorder %v988_v22, 8.507059e+37 }
 0x945   :  { %v696_v37 = vsel %vm695_vm15, %v694_v24, 0.0  ;;  %1295 = vrcp.f32 %v1970_v47  ;;  %vm1004_vm12 = vweird.f32 %v1970_v47  ;;  %v1008_v17 = vand.u32 2147483647, %v1970_v47  ;;  %v747_v27 = vpop.xlane.xlu2 %746 }
 0x946   :  { %697 = vadd.xlane.f32.xlu0 %v696_v37  ;;  %1297 = vlog2.f32 %v1970_v47  ;;  %v1010_v7 = vand.u32 2147483648, %v1970_v47  ;;  %v994_v41 = vmul.f32 %v1967_v32, %v973_v38  ;;  %v748_v29 = vrot.slane %v747_v27, 4 }
 0x947   :  { %vm1009_vm5 = vcmp.eq.f32.partialorder %v1008_v17, 8.507059e+37 }
 0x948   :  { %v1290_v48 = vpop.eup %1289  ;;  %v1011_v24 = vor.u32 1.1754944e-38, %v1010_v7  ;;  %1299 = vlog2.f32 %v994_v41 }
 0x949   :  { %v731_v49 = vmul.f32 0.6931472, %v1290_v48  ;;  %v1976_v50 = vpop.eup %1291 }
 0x94a   :  { %v959_v15 = vmul.f32 %v1976_v50, %v1957_v28  ;;  %v2002_v59 = vpop.eup %1293  ;;  %vm964_vm11 = vweird.f32 %v1976_v50 }
 0x94b   :  { %v732_v54 = vadd.f32 %v731_v49, %v1727_v53  ;;  %v948_v53 = vand.u32 2147483648, %v1941_v4  ;;  %v980_v8 = vmul.f32 %v2002_v59, %v1967_v32  ;;  %v1296_v9 = vpop.eup %1295  ;;  %vm2046_vm1 = vmor %vm963_vm10, %vm964_vm11  ;;  %vm985_vm3 = vweird.f32 %v2002_v59 }
 0x94c   :  { %v960_v61 = vsub.f32 1.0, %v959_v15  ;;  %v1000_v18 = vmul.f32 %v1296_v9, %v1970_v47  ;;  %vm1005_vm13 = vweird.f32 %v1296_v9  ;;  %v990_v4 = vand.u32 2147483648, %v1967_v32  ;;  %v1298_v37 = vpop.eup %1297 }
 0x94d   :  { %v733_v60 = vsel %vm695_vm15, %v732_v54, 0.0  ;;  %v949_v55 = vor.u32 1.1754944e-38, %v948_v53  ;;  %v981_v13 = vsub.f32 1.0, %v980_v8  ;;  %vm984_vm15 = vweird.f32 %v1967_v32  ;;  %vm2062_vm4 = vmor %vm1004_vm12, %vm1005_vm13  ;;  %v1222_v32 = vld [vmem:[%s2109_s11] ss:$0 sm:$0xff] }
 0x94e   :  { %734 = vadd.xlane.f32.xlu1 %v733_v60  ;;  %902 = vadd.xlane.f32.xlu0 %v901_v56  ;;  %v961_v6 = vmul.f32 %v1976_v50, %v960_v61  ;;  %v1001_v25 = vsub.f32 1.0, %v1000_v18  ;;  %vm2071_vm6 = vmor %vm984_vm15, %vm985_vm3  ;;  %v998_v39 = vmul.f32 0.6931472, %v1298_v37  ;;  %v1157_v54 = vadd.f32 -0.5, %v1970_v47  ;;  %v1300_v40 = vpop.eup %1299 }
 0x94f   :  { %v982_v20 = vmul.f32 %v2002_v59, %v981_v13  ;;  %v950_v3 = vsel %vm2015_vm9, %v949_v55, %v945_v12  ;;  %v978_v56 = vadd.f32 13.0, %v1973_v23  ;;  %v1042_v18 = vsub.f32 %v1807_v57, %v1222_v32 }
 0x950   :  { %v962_v44 = vadd.f32 %v1976_v50, %v961_v6  ;;  %v1002_v33 = vmul.f32 %v1296_v9, %v1001_v25  ;;  %v951_v45 = vmul.f32 %v950_v3, %v936_v26  ;;  %v1023_v19 = vmul.f32 %v1157_v54, %v998_v39 }
 0x951   :  { %v983_v42 = vadd.f32 %v2002_v59, %v982_v20  ;;  %v1028_v7 = vmul.f32 0.6931472, %v1300_v40 }
 0x952   :  { %v966_v35 = vsel %vm2046_vm1, %v1976_v50, %v962_v44  ;;  %v1003_v2 = vadd.f32 %v1296_v9, %v1002_v33  ;;  %v991_v50 = vor.u32 1.1754944e-38, %v990_v4  ;;  %v953_v15 = vadd.f32 %v951_v45, %v932_v43 }
 0x953   :  { %v971_v49 = vsel %vm2050_vm14, %v970_v34, %v966_v35  ;;  %v987_v28 = vsel %vm2071_vm6, %v2002_v59, %v983_v42  ;;  %v1024_v55 = vsub.f32 %v1023_v19, %v1970_v47  ;;  %v749_v34 = vadd.f32 %v748_v29, %v747_v27 }
 0x954   :  { %v1007_v48 = vsel %vm2062_vm4, %v1296_v9, %v1003_v2  ;;  %v972_v58 = vmul.f32 %v971_v49, %v957_v46  ;;  %v992_v61 = vsel %vm989_vm7, %v991_v50, %v987_v28  ;;  %v1529_v4 = vmov 16.0  }
 0x955   :  { %v1012_v51 = vsel %vm1009_vm5, %v1011_v24, %v1007_v48  ;;  %v993_v59 = vmul.f32 %v992_v61, %v978_v56  ;;  %v1025_v12 = vadd.f32 0.9189385, %v1024_v55  ;;  %1301 = vrcp.f32 %v1529_v4 }
 0x956   :  { %v1014_v52 = vmul.f32 %v1012_v51, %v1012_v51  ;;  %v1035_v63 = vmul.f32 0.5, %v1012_v51  ;;  %v974_v0 = vadd.f32 %v972_v58, %v953_v15  ;;  %v750_v36 = vrot.slane %v749_v34, 2 }
 0x958   :  { %v1015_v60 = vmul.f32 -0.0005952381, %v1014_v52  ;;  %v1030_v53 = vmul.f32 0.003968254, %v1014_v52  ;;  %v1036_v6 = vsub.f32 %v998_v39, %v1035_v63  ;;  %v995_v8 = vadd.f32 %v993_v59, %v974_v0 }
 0x959   :  { %v751_v46 = vadd.f32 %v750_v36, %v749_v34 }
 0x95a   :  { %v1016_v5 = vadd.f32 0.0007936508, %v1015_v60  ;;  %v1031_v62 = vadd.f32 -0.008333334, %v1030_v53 }
 0x95b   :  { %v1302_v38 = vpop.eup %1301 }
 0x95c   :  { %v1017_v14 = vmul.f32 %v1016_v5, %v1014_v52  ;;  %v1032_v16 = vmul.f32 %v1031_v62, %v1014_v52  ;;  %v758_v48 = vmul.f32 16.0, %v1302_v38  ;;  %v1113_v5 = vpop.xlane.xlu2 %1112 }
 0x95d   :  { %v1114_v19 = vrot.slane %v1113_v5, 4 }
 0x95e   :  { %v1018_v1 = vadd.f32 -0.0027777778, %v1017_v14  ;;  %v1033_v23 = vadd.f32 0.083333336, %v1032_v16 }
 0x95f   :  { %v1115_v62 = vadd.f32 %v1114_v19, %v1113_v5 }
 0x960   :  { %v1019_v9 = vmul.f32 %v1018_v1, %v1014_v52  ;;  %v1034_v10 = vmul.f32 %v1033_v23, %v1014_v52  ;;  %v752_v52 = vrot.slane %v751_v46, 1 }
 0x961   :  { %v1116_v63 = vrot.slane %v1115_v62, 2 }
 0x962   :  { %v1020_v11 = vadd.f32 0.083333336, %v1019_v9  ;;  %v1037_v13 = vsub.f32 %v1036_v6, %v1034_v10  ;;  %v753_v60 = vadd.f32 %v752_v52, %v751_v46 }
 0x963   :  { %v1117_v16 = vadd.f32 %v1116_v63, %v1115_v62 }
 0x964   :  { %v1021_v17 = vmul.f32 %v1020_v11, %v1012_v51  ;;  %v1038_v44 = vsub.f32 %v1037_v13, %v995_v8  ;;  %v759_v51 = vsub.f32 1.0, %v758_v48 }
 0x965   :  { %v1118_v23 = vrot.slane %v1117_v16, 1 }
 0x966   :  { %v1026_v20 = vadd.f32 %v1025_v12, %v1021_v17  ;;  %v1043_v47 = vmul.f32 %v1042_v18, %v1038_v44  ;;  %v760_v54 = vmul.f32 %v1302_v38, %v759_v51 }
 0x967   :  { %v1119_v8 = vadd.f32 %v1118_v23, %v1117_v16 }
 0x968   :  { %v1029_v25 = vsub.f32 %v1026_v20, %v1028_v7  ;;  %v761_v15 = vadd.f32 %v1302_v38, %v760_v54 }
 0x96a   :  { %v1044_v21 = vsub.f32 %v1043_v47, %v1029_v25 }
 0x96c   :  { %v1045_v26 = vsel %vm900_vm2, %v1044_v21, 0.0  ;;  %vm762_vm2 = vweird.f32 %v1302_v38 }
 0x96d   :  { %1046 = vadd.xlane.f32.xlu1 %v1045_v26  ;;  %v763_v53 = vsel %vm762_vm2, %v1302_v38, %v761_v15 }
 0x9b9   :  { %v698_v30 = vpop.xlane.xlu0 %697 }
 0x9ba   :  { %v699_v3 = vrot.slane %v698_v30, 4 }
 0x9bc   :  { %v700_v33 = vadd.f32 %v699_v3, %v698_v30 }
 0x9be   :  { %v701_v22 = vrot.slane %v700_v33, 2 }
 0x9c0   :  { %v702_v57 = vadd.f32 %v701_v22, %v700_v33 }
 0x9c1   :  { %v735_v24 = vpop.xlane.xlu1 %734  ;;  %v903_v35 = vpop.xlane.xlu0 %902 }
 0x9c2   :  { %v736_v42 = vrot.slane %v735_v24, 4  ;;  %v904_v2 = vrot.slane %v903_v35, 4  ;;  %v703_v37 = vrot.slane %v702_v57, 1 }
 0x9c4   :  { %v737_v31 = vadd.f32 %v736_v42, %v735_v24  ;;  %v905_v43 = vadd.f32 %v904_v2, %v903_v35  ;;  %v704_v45 = vadd.f32 %v703_v37, %v702_v57 }
 0x9c6   :  { %v738_v49 = vrot.slane %v737_v31, 2  ;;  %v906_v50 = vrot.slane %v905_v43, 2  ;;  %1195 = vpush %v704_v45 }
 0x9c8   :  { %v907_v28 = vadd.f32 %v906_v50, %v905_v43  ;;  %v739_v39 = vadd.f32 %v738_v49, %v737_v31 }
 0x9ca   :  { %v740_v56 = vrot.slane %v739_v39, 1  ;;  %v908_v41 = vrot.slane %v907_v28, 1 }
 0x9cc   :  { %v741_v58 = vadd.f32 %v740_v56, %v739_v39  ;;  %v909_v61 = vadd.f32 %v908_v41, %v907_v28 }
 0x9ce   :  { %1197 = vpush %v741_v58 }
 0x9cf   :  { %1199 = vpush %v753_v60 }
 0x9d0   :  { %1201 = vpush %v763_v53 }
 0x9d1   :  { %1203 = vpush %v909_v61 }
 0x9e0   :  { %v1047_v0 = vpop.xlane.xlu1 %1046 }
 0x9e1   :  { %v1048_v59 = vrot.slane %v1047_v0, 4 }
 0x9e3   :  { %v1049_v14 = vadd.f32 %v1048_v59, %v1047_v0 }
 0x9e5   :  { %v1050_v1 = vrot.slane %v1049_v14, 2 }
 0x9e7   :  { %v1051_v55 = vadd.f32 %v1050_v1, %v1049_v14 }
 0x9e9   :  { %v1052_v6 = vrot.slane %v1051_v55, 1 }
 0x9eb   :  { %v1053_v32 = vadd.f32 %v1052_v6, %v1051_v55 }
 0x9ed   :  { %1205 = vpush %v1053_v32 }
 0x9ee   :  { %1207 = vpush %v1119_v8 }
 0x9f7   :  { %s1196_s11 = spop %1195 }
 0x9ff   :  { %s1198_s30 = spop %1197 }
 0xa00   :  { %s1200_s14 = spop %1199  ;;  %s743_s0 = sadd.f32 %s1198_s30, %s1196_s11 }
 0xa01   :  { %s755_s15 = smul.f32 4.0, %s1200_s14  ;;  %s1202_s17 = spop %1201 }
 0xa02   :  { %s1204_s19 = spop %1203 }
 0xa03   :  { %s756_s16 = ssub.f32 %s743_s0, %s755_s15 }
 0xa05   :  { %s765_s18 = smul.f32 %s1202_s17, %s756_s16 }
 0xa07   :  { %s1124_s7 = sadd.f32 %s1123_s2, %s765_s18 }
 0xa1e   :  { %s1206_s1 = spop %1205 }
 0xa1f   :  { %s1055_s21 = sadd.f32 %s1206_s1, %s1204_s19  ;;  %s1208_s4 = spop %1207 }
 0xa20   :  { %s1121_s6 = smul.f32 48.0, %s1208_s4 }
 0xa22   :  { %s1122_s26 = sadd.f32 %s1121_s6, %s1055_s21 }
 0xa24   :  { %s1125_s27 = sadd.f32 %s1124_s7, %s1122_s26 }
 0xa26   :  { %1127 = sst [smem:[#allocation16]] %s1125_s27 }
 0xa27   :  { %1136 = dma.smem_to_hbm %s1530_s28, 16, %s1134_s25, [#allocation4]  }
 0xa28   :  { %1517 = dma.done.wait [#allocation4], 16  }
 0xa29   :  { %1518 = vsyncadd [#allocation4], 4294967280 }
 0xa2a   :  { %1141 = sfence }
 0xa2b   :  { %1142 = vsyncpa [#allocation3], 1 }
 0xa2c   :  { %1143 = vsyncpa [#allocation6], 1 }
 0xa2d   :  { %1144 = vsyncpa [#allocation9], 1 }
 0xa2e   :  { %1145 = vsyncpa [#allocation12], 1 }
 0xa2f   :  { %1146 = vsyncpa [#allocation15], 1 }
 0xa30   :  { %1147 = vsyncpa [#allocation4], 1 }

</bundles_post_ra>
